<compile_context>
chip_gen: v7x
topology: tpu7x:2x2x1
jax: 0.10.0
libtpu: 0.0.40
codegen_flags: <defaults>
</compile_context>

<pallas_src>
import functools

import jax
import jax.numpy as jnp
from jax import lax
from jax.experimental import pallas as pl
from jax.experimental.pallas import tpu as pltpu


def _gru_fc_kernel(x_ref, w_ih_ref, w_hh_ref, b_i_ref, b_hn_ref,
                   w_fc_ref, b_fc_ref, out_ref, h_scratch, gi_scratch, *,
                   seq_len):
    tb = pl.program_id(1)                      # time-block index (innermost)
    Bb, Tb, H = x_ref.shape
    cdt = w_ih_ref.dtype                       # matmul compute dtype
    prec = (lax.Precision.HIGHEST if cdt == jnp.float32
            else lax.Precision.DEFAULT)

    @pl.when(tb == 0)
    def _():
        h_scratch[...] = jnp.zeros_like(h_scratch)

    # ---- Hoisted input transform (off the serial chain): one
    # (Tb*Bb, H) x (H, 3H) matmul for all three gates of every step in the
    # block, staged time-major so each recurrent step reads a contiguous
    # (Bb, 3H) slab via a leading-dim dynamic index.
    xt = pltpu.einshape("btd->tbd", x_ref[...])            # (Tb, Bb, H)
    xt = xt.reshape(Tb * Bb, H).astype(cdt)                # layout-preserving (Bb % 8 == 0)
    gi = jnp.dot(xt, w_ih_ref[...],
                 preferred_element_type=jnp.float32, precision=prec)
    gi = gi + b_i_ref[...]                                 # b_ih (+ folded b_hh for r/z)
    gi_scratch[...] = gi.reshape(Tb, Bb, 3 * H)

    # ---- Recurrence: only h @ W_hh_packed stays on the sequential chain.
    w_hh = w_hh_ref[...]                                   # (H, 3H), gates r|z|n
    b_hn = b_hn_ref[...]                                   # (1, H)
    needs_mask = (seq_len % Tb) != 0                       # static Python branch

    def step(t, h):
        gi_t = gi_scratch[t]                               # (Bb, 3H) contiguous
        hc = h.astype(cdt)
        gh = jnp.dot(hc, w_hh,
                     preferred_element_type=jnp.float32, precision=prec)
        r = jax.nn.sigmoid(gi_t[:, 0:H] + gh[:, 0:H])
        z = jax.nn.sigmoid(gi_t[:, H:2 * H] + gh[:, H:2 * H])
        n = jnp.tanh(gi_t[:, 2 * H:] + r * (gh[:, 2 * H:] + b_hn))
        h_new = (1.0 - z) * n + z * h
        if needs_mask:
            # Padded tail steps of the last block carry Pallas block-padding
            # garbage through the gate math; it is discarded by this select.
            # Keep this select as the LAST op of the step.
            valid = (tb * Tb + t) < seq_len
            h_new = jnp.where(valid, h_new, h)
        return h_new

    unroll = max(u for u in (8, 4, 2, 1) if Tb % u == 0)
    h = lax.fori_loop(0, Tb, step, h_scratch[...], unroll=unroll)
    h_scratch[...] = h

    @pl.when(tb == pl.num_programs(1) - 1)
    def _():
        # FC head: N=1 is a degenerate MXU shape -> VPU multiply + lane reduce.
        out = jnp.sum(h * w_fc_ref[...], axis=-1, keepdims=True) + b_fc_ref[...]
        out_ref[...] = out.astype(out_ref.dtype)


def discriminator_forward(h, params, *, block_t=128, block_b=None,
                          compute_dtype=jnp.float32):
    """h: (B, T, H) float32 -> (B, 1) float32."""
    B, T, H = h.shape
    H3 = 3 * H

    # Time block: full T if it fits, else a multiple of 8 (sublane dim).
    # A large Tb amortizes ~0.35us/grid-step overhead; the in-block recurrence
    # is a fori_loop, so a large Tb does not bloat code size or live ranges.
    if T <= block_t:
        Tb = T
    else:
        Tb = max(8, (block_t // 8) * 8)
    n_t = pl.cdiv(T, Tb)

    # Batch: pad to a multiple of 8 so (Bb, *) tiles use full f32 sublanes and
    # the (Tb, Bb, H) <-> (Tb*Bb, H) reshapes stay layout-preserving.
    B_pad = -(-B // 8) * 8
    if B_pad != B:
        h = jnp.pad(h, ((0, B_pad - B), (0, 0), (0, 0)))
    if block_b is None:
        Bb = B_pad        # single batch block (best for single-TC v5e/v6e)
    else:
        # v7x: pass block_b = B//2 (multiple of 8) when B >= 16 so the
        # "parallel" batch axis has >= 2 blocks and both TensorCores run.
        Bb = max(8, (min(block_b, B_pad) // 8) * 8)
        assert B_pad % Bb == 0, "batch block must divide padded batch"
    n_b = B_pad // Bb

    cdt = compute_dtype
    # Lane-packed weights (H, 3H): columns ordered [r | z | n] (PyTorch order).
    w_ih = params["w_ih"].T.astype(cdt)
    w_hh = params["w_hh"].T.astype(cdt)
    b_ih = params["b_ih"].astype(jnp.float32)
    b_hh = params["b_hh"].astype(jnp.float32)
    # Fold the r/z hidden biases into the hoisted input-side bias; only the
    # n-gate hidden bias stays per-step (it sits inside r * (...)).
    b_i = jnp.concatenate([b_ih[:2 * H] + b_hh[:2 * H], b_ih[2 * H:]]).reshape(1, H3)
    b_hn = b_hh[2 * H:].reshape(1, H)
    w_fc = params["w_fc"].reshape(1, H).astype(jnp.float32)
    b_fc = params["b_fc"].reshape(1, 1).astype(jnp.float32)

    kernel = functools.partial(_gru_fc_kernel, seq_len=T)

    out = pl.pallas_call(
        kernel,
        out_shape=jax.ShapeDtypeStruct((B_pad, 1), jnp.float32),
        grid_spec=pltpu.PrefetchScalarGridSpec(
            num_scalar_prefetch=0,
            grid=(n_b, n_t),                                     # batch outer, time inner
            in_specs=[
                pl.BlockSpec((Bb, Tb, H), lambda b, t: (b, t, 0)),   # x time block
                pl.BlockSpec((H, H3), lambda b, t: (0, 0)),          # W_ih packed
                pl.BlockSpec((H, H3), lambda b, t: (0, 0)),          # W_hh packed
                pl.BlockSpec((1, H3), lambda b, t: (0, 0)),          # b_ih (+ b_hh r/z)
                pl.BlockSpec((1, H), lambda b, t: (0, 0)),           # b_hh (n gate)
                pl.BlockSpec((1, H), lambda b, t: (0, 0)),           # W_fc row
                pl.BlockSpec((1, 1), lambda b, t: (0, 0)),           # b_fc
            ],
            out_specs=pl.BlockSpec((Bb, 1), lambda b, t: (b, 0)),
            scratch_shapes=[
                pltpu.VMEM((Bb, H), jnp.float32),        # hidden-state carry
                pltpu.VMEM((Tb, Bb, H3), jnp.float32),   # staged gate inputs (time-major)
            ],
        ),
        compiler_params=pltpu.CompilerParams(
            # Batch blocks are independent (megacore-shardable); the time axis
            # is a sequential recurrence through the VMEM carry.
            dimension_semantics=("parallel", "arbitrary"),
            # 48 MiB: plenty of headroom for large Tb at this H and still
            # within v7x's 64 MiB per-TensorCore VMEM.
            vmem_limit_bytes=48 * 1024 * 1024,
        ),
    )(h, w_ih, w_hh, b_i, b_hn, w_fc, b_fc)

    return out[:B]


def init_params(key, hidden_dim):
    """Deterministic init matching PyTorch GRU/Linear parameter shapes."""
    H = hidden_dim
    k = 1.0 / jnp.sqrt(jnp.float32(H))
    ks = jax.random.split(key, 6)
    u = lambda kk, shape: jax.random.uniform(kk, shape, jnp.float32, -k, k)
    return {
        "w_ih": u(ks[0], (3 * H, H)),   # gates [r, z, n]
        "w_hh": u(ks[1], (3 * H, H)),
        "b_ih": u(ks[2], (3 * H,)),
        "b_hh": u(ks[3], (3 * H,)),
        "w_fc": u(ks[4], (1, H)),
        "b_fc": u(ks[5], (1,)),
    }


def discriminator_ref(h, params):
    """Pure-JAX reference (lax.scan GRU) for correctness check."""
    B, T, H = h.shape
    w_ih, w_hh = params["w_ih"], params["w_hh"]
    b_ih, b_hh = params["b_ih"], params["b_hh"]
    hi = lax.Precision.HIGHEST

    def step(h_prev, x_t):
        gi = jnp.dot(x_t, w_ih.T, precision=hi) + b_ih
        gh = jnp.dot(h_prev, w_hh.T, precision=hi) + b_hh
        r = jax.nn.sigmoid(gi[:, :H] + gh[:, :H])
        z = jax.nn.sigmoid(gi[:, H:2 * H] + gh[:, H:2 * H])
        n = jnp.tanh(gi[:, 2 * H:] + r * gh[:, 2 * H:])
        h_new = (1.0 - z) * n + z * h_prev
        return h_new, None

    h0 = jnp.zeros((B, H), jnp.float32)
    h_last, _ = lax.scan(step, h0, jnp.transpose(h, (1, 0, 2)))
    return jnp.dot(h_last, params["w_fc"].T, precision=hi) + params["b_fc"]


if __name__ == "__main__":
    B, T, H = 4, 8, 32
    key = jax.random.PRNGKey(0)
    k_in, k_par = jax.random.split(key)
    h_in = jax.random.normal(k_in, (B, T, H), jnp.float32)
    params = init_params(k_par, H)

    ref = discriminator_ref(h_in, params)

    # f32 matmul path.
    out_f32 = jax.block_until_ready(discriminator_forward(h_in, params))
    assert out_f32.shape == (B, 1)
    assert jnp.allclose(out_f32, ref, atol=2e-3, rtol=2e-3), "f32 mismatch"

    # bf16 MXU inputs (gate math and the hidden-state carry stay f32).  Note:
    # bf16 re-cast of h each step compounds over long T; prefer f32 for long
    # sequences.
    out_bf16 = jax.block_until_ready(
        discriminator_forward(h_in, params, compute_dtype=jnp.bfloat16))
    assert out_bf16.shape == (B, 1)
    assert jnp.allclose(out_bf16, ref, atol=5e-2, rtol=5e-2), "bf16 mismatch"

    # Longer sequence exercising multiple time blocks + a padded tail block.
    T2 = 36
    h2 = jax.random.normal(jax.random.PRNGKey(1), (B, T2, H), jnp.float32)
    ref2 = discriminator_ref(h2, params)
    out2 = jax.block_until_ready(discriminator_forward(h2, params, block_t=16))
    assert jnp.allclose(out2, ref2, atol=2e-3, rtol=2e-3), "multi-block mismatch"

    print("KERNEL_OK")
</pallas_src>

<mosaic_0001>
module attributes {stable_mosaic.version = 11 : i64} {
  func.func @_gru_fc_kernel(%arg0: i32, %arg1: i32, %arg2: memref<8x8x32xf32, #tpu.memory_space<vmem>>, %arg3: memref<32x96xf32, #tpu.memory_space<vmem>>, %arg4: memref<32x96xf32, #tpu.memory_space<vmem>>, %arg5: memref<1x96xf32, #tpu.memory_space<vmem>>, %arg6: memref<1x32xf32, #tpu.memory_space<vmem>>, %arg7: memref<1x32xf32, #tpu.memory_space<vmem>>, %arg8: memref<1x1xf32, #tpu.memory_space<vmem>>, %arg9: memref<8x1xf32, #tpu.memory_space<vmem>>, %arg10: memref<8x32xf32, #tpu.memory_space<vmem>>, %arg11: memref<8x8x96xf32, #tpu.memory_space<vmem>>) attributes {dimension_semantics = [#tpu.dimension_semantics<parallel>, #tpu.dimension_semantics<arbitrary>], iteration_bounds = array<i64: 1, 1>, scalar_prefetch = 0 : i64, scratch_operands = 2 : i64, tpu.core_type = #tpu.core_type<tc>, window_params = [{transform_indices = @transform_0, window_bounds = array<i64: 8, 8, 32>}, {pipeline_mode = #tpu.pipeline_mode<synchronous>, transform_indices = @transform_1, window_bounds = array<i64: 32, 96>}, {pipeline_mode = #tpu.pipeline_mode<synchronous>, transform_indices = @transform_2, window_bounds = array<i64: 32, 96>}, {pipeline_mode = #tpu.pipeline_mode<synchronous>, transform_indices = @transform_3, window_bounds = array<i64: 1, 96>}, {pipeline_mode = #tpu.pipeline_mode<synchronous>, transform_indices = @transform_4, window_bounds = array<i64: 1, 32>}, {pipeline_mode = #tpu.pipeline_mode<synchronous>, transform_indices = @transform_5, window_bounds = array<i64: 1, 32>}, {pipeline_mode = #tpu.pipeline_mode<synchronous>, transform_indices = @transform_6, window_bounds = array<i64: 1, 1>}, {transform_indices = @transform_7, window_bounds = array<i64: 8, 1>}]} {
    %c0_i32 = arith.constant 0 : i32
    %0 = arith.cmpi eq, %arg1, %c0_i32 : i32
    %1 = arith.extui %0 : i1 to i32
    %c0_i32_0 = arith.constant 0 : i32
    %2 = arith.cmpi ne, %1, %c0_i32_0 : i32
    scf.if %2 {
      %cst_69 = arith.constant 0.000000e+00 : f32
      %276 = vector.broadcast %cst_69 : f32 to vector<8x32xf32>
      %c0_70 = arith.constant 0 : index
      %c0_71 = arith.constant 0 : index
      %277 = vector.load %arg10[%c0_70, %c0_71] : memref<8x32xf32, #tpu.memory_space<vmem>>, vector<8x32xf32>
      tpu.vector_store %arg10[%c0_70, %c0_71], %276 {strides = array<i32>} : memref<8x32xf32, #tpu.memory_space<vmem>>, vector<8x32xf32>,
    } else {
    }
    %c0 = arith.constant 0 : index
    %c0_1 = arith.constant 0 : index
    %c0_2 = arith.constant 0 : index
    %3 = vector.load %arg2[%c0, %c0_1, %c0_2] : memref<8x8x32xf32, #tpu.memory_space<vmem>>, vector<8x8x32xf32>
    %4 = tpu.transpose %3, [1, 0, 2] : vector<8x8x32xf32> -> vector<8x8x32xf32>
    %5 = vector.shape_cast %4 : vector<8x8x32xf32> to vector<64x32xf32>
    %c0_3 = arith.constant 0 : index
    %c0_4 = arith.constant 0 : index
    %6 = vector.load %arg3[%c0_3, %c0_4] : memref<32x96xf32, #tpu.memory_space<vmem>>, vector<32x96xf32>
    %cst = arith.constant dense<0.000000e+00> : vector<64x96xf32>
    %7 = tpu.matmul %5, %6, %cst {dimension_numbers = #tpu.dot_dimension_numbers<[1], [0], [0], [1], [0, 0, 1, 1], [], []>, precision = #tpu.contract_precision<fp32>} : vector<64x32xf32>, vector<32x96xf32>, vector<64x96xf32> -> vector<64x96xf32>
    %c0_5 = arith.constant 0 : index
    %c0_6 = arith.constant 0 : index
    %8 = vector.load %arg5[%c0_5, %c0_6] : memref<1x96xf32, #tpu.memory_space<vmem>>, vector<1x96xf32>
    %9 = vector.broadcast %8 : vector<1x96xf32> to vector<64x96xf32>
    %10 = arith.addf %7, %9 : vector<64x96xf32>
    %11 = vector.shape_cast %10 : vector<64x96xf32> to vector<8x8x96xf32>
    %c0_7 = arith.constant 0 : index
    %c0_8 = arith.constant 0 : index
    %c0_9 = arith.constant 0 : index
    %12 = vector.load %arg11[%c0_7, %c0_8, %c0_9] : memref<8x8x96xf32, #tpu.memory_space<vmem>>, vector<8x8x96xf32>
    tpu.vector_store %arg11[%c0_7, %c0_8, %c0_9], %11 {strides = array<i32>} : memref<8x8x96xf32, #tpu.memory_space<vmem>>, vector<8x8x96xf32>,
    %c0_10 = arith.constant 0 : index
    %c0_11 = arith.constant 0 : index
    %13 = vector.load %arg4[%c0_10, %c0_11] : memref<32x96xf32, #tpu.memory_space<vmem>>, vector<32x96xf32>
    %c0_12 = arith.constant 0 : index
    %c0_13 = arith.constant 0 : index
    %14 = vector.load %arg6[%c0_12, %c0_13] : memref<1x32xf32, #tpu.memory_space<vmem>>, vector<1x32xf32>
    %c0_14 = arith.constant 0 : index
    %c0_15 = arith.constant 0 : index
    %15 = vector.load %arg10[%c0_14, %c0_15] : memref<8x32xf32, #tpu.memory_space<vmem>>, vector<8x32xf32>
    %c0_i32_16 = arith.constant 0 : i32
    %16 = arith.index_cast %c0_i32_16 : i32 to index
    %c0_17 = arith.constant 0 : index
    %c0_18 = arith.constant 0 : index
    %17 = vector.load %arg11[%16, %c0_17, %c0_18] : memref<8x8x96xf32, #tpu.memory_space<vmem>>, vector<1x8x96xf32>
    %18 = vector.shape_cast %17 : vector<1x8x96xf32> to vector<8x96xf32>
    %cst_19 = arith.constant dense<0.000000e+00> : vector<8x96xf32>
    %19 = tpu.matmul %15, %13, %cst_19 {dimension_numbers = #tpu.dot_dimension_numbers<[1], [0], [0], [1], [0, 0, 1, 1], [], []>, precision = #tpu.contract_precision<fp32>} : vector<8x32xf32>, vector<32x96xf32>, vector<8x96xf32> -> vector<8x96xf32>
    %20 = vector.extract_strided_slice %18 {offsets = [0, 0], sizes = [8, 32], strides = [1, 1]} : vector<8x96xf32> to vector<8x32xf32>
    %21 = vector.extract_strided_slice %19 {offsets = [0, 0], sizes = [8, 32], strides = [1, 1]} : vector<8x96xf32> to vector<8x32xf32>
    %22 = arith.addf %20, %21 : vector<8x32xf32>
    %23 = arith.negf %22 : vector<8x32xf32>
    %24 = math.exp %23 : vector<8x32xf32>
    %cst_20 = arith.constant 1.000000e+00 : f32
    %25 = vector.broadcast %cst_20 : f32 to vector<8x32xf32>
    %26 = arith.addf %25, %24 : vector<8x32xf32>
    %27 = arith.divf %25, %26 : vector<8x32xf32>
    %28 = vector.extract_strided_slice %18 {offsets = [0, 32], sizes = [8, 32], strides = [1, 1]} : vector<8x96xf32> to vector<8x32xf32>
    %29 = vector.extract_strided_slice %19 {offsets = [0, 32], sizes = [8, 32], strides = [1, 1]} : vector<8x96xf32> to vector<8x32xf32>
    %30 = arith.addf %28, %29 : vector<8x32xf32>
    %31 = arith.negf %30 : vector<8x32xf32>
    %32 = math.exp %31 : vector<8x32xf32>
    %cst_21 = arith.constant 1.000000e+00 : f32
    %33 = vector.broadcast %cst_21 : f32 to vector<8x32xf32>
    %34 = arith.addf %33, %32 : vector<8x32xf32>
    %35 = arith.divf %33, %34 : vector<8x32xf32>
    %36 = vector.extract_strided_slice %18 {offsets = [0, 64], sizes = [8, 32], strides = [1, 1]} : vector<8x96xf32> to vector<8x32xf32>
    %37 = vector.extract_strided_slice %19 {offsets = [0, 64], sizes = [8, 32], strides = [1, 1]} : vector<8x96xf32> to vector<8x32xf32>
    %38 = vector.broadcast %14 : vector<1x32xf32> to vector<8x32xf32>
    %39 = arith.addf %37, %38 : vector<8x32xf32>
    %40 = arith.mulf %27, %39 : vector<8x32xf32>
    %41 = arith.addf %36, %40 : vector<8x32xf32>
    %42 = math.tanh %41 : vector<8x32xf32>
    %cst_22 = arith.constant 1.000000e+00 : f32
    %43 = vector.broadcast %cst_22 : f32 to vector<8x32xf32>
    %44 = arith.subf %43, %35 : vector<8x32xf32>
    %45 = arith.mulf %44, %42 : vector<8x32xf32>
    %46 = arith.mulf %35, %15 : vector<8x32xf32>
    %47 = arith.addf %45, %46 : vector<8x32xf32>
    %c1_i32 = arith.constant 1 : i32
    %48 = arith.index_cast %c1_i32 : i32 to index
    %c0_23 = arith.constant 0 : index
    %c0_24 = arith.constant 0 : index
    %49 = vector.load %arg11[%48, %c0_23, %c0_24] : memref<8x8x96xf32, #tpu.memory_space<vmem>>, vector<1x8x96xf32>
    %50 = vector.shape_cast %49 : vector<1x8x96xf32> to vector<8x96xf32>
    %cst_25 = arith.constant dense<0.000000e+00> : vector<8x96xf32>
    %51 = tpu.matmul %47, %13, %cst_25 {dimension_numbers = #tpu.dot_dimension_numbers<[1], [0], [0], [1], [0, 0, 1, 1], [], []>, precision = #tpu.contract_precision<fp32>} : vector<8x32xf32>, vector<32x96xf32>, vector<8x96xf32> -> vector<8x96xf32>
    %52 = vector.extract_strided_slice %50 {offsets = [0, 0], sizes = [8, 32], strides = [1, 1]} : vector<8x96xf32> to vector<8x32xf32>
    %53 = vector.extract_strided_slice %51 {offsets = [0, 0], sizes = [8, 32], strides = [1, 1]} : vector<8x96xf32> to vector<8x32xf32>
    %54 = arith.addf %52, %53 : vector<8x32xf32>
    %55 = arith.negf %54 : vector<8x32xf32>
    %56 = math.exp %55 : vector<8x32xf32>
    %cst_26 = arith.constant 1.000000e+00 : f32
    %57 = vector.broadcast %cst_26 : f32 to vector<8x32xf32>
    %58 = arith.addf %57, %56 : vector<8x32xf32>
    %59 = arith.divf %57, %58 : vector<8x32xf32>
    %60 = vector.extract_strided_slice %50 {offsets = [0, 32], sizes = [8, 32], strides = [1, 1]} : vector<8x96xf32> to vector<8x32xf32>
    %61 = vector.extract_strided_slice %51 {offsets = [0, 32], sizes = [8, 32], strides = [1, 1]} : vector<8x96xf32> to vector<8x32xf32>
    %62 = arith.addf %60, %61 : vector<8x32xf32>
    %63 = arith.negf %62 : vector<8x32xf32>
    %64 = math.exp %63 : vector<8x32xf32>
    %cst_27 = arith.constant 1.000000e+00 : f32
    %65 = vector.broadcast %cst_27 : f32 to vector<8x32xf32>
    %66 = arith.addf %65, %64 : vector<8x32xf32>
    %67 = arith.divf %65, %66 : vector<8x32xf32>
    %68 = vector.extract_strided_slice %50 {offsets = [0, 64], sizes = [8, 32], strides = [1, 1]} : vector<8x96xf32> to vector<8x32xf32>
    %69 = vector.extract_strided_slice %51 {offsets = [0, 64], sizes = [8, 32], strides = [1, 1]} : vector<8x96xf32> to vector<8x32xf32>
    %70 = vector.broadcast %14 : vector<1x32xf32> to vector<8x32xf32>
    %71 = arith.addf %69, %70 : vector<8x32xf32>
    %72 = arith.mulf %59, %71 : vector<8x32xf32>
    %73 = arith.addf %68, %72 : vector<8x32xf32>
    %74 = math.tanh %73 : vector<8x32xf32>
    %cst_28 = arith.constant 1.000000e+00 : f32
    %75 = vector.broadcast %cst_28 : f32 to vector<8x32xf32>
    %76 = arith.subf %75, %67 : vector<8x32xf32>
    %77 = arith.mulf %76, %74 : vector<8x32xf32>
    %78 = arith.mulf %67, %47 : vector<8x32xf32>
    %79 = arith.addf %77, %78 : vector<8x32xf32>
    %c2_i32 = arith.constant 2 : i32
    %80 = arith.index_cast %c2_i32 : i32 to index
    %c0_29 = arith.constant 0 : index
    %c0_30 = arith.constant 0 : index
    %81 = vector.load %arg11[%80, %c0_29, %c0_30] : memref<8x8x96xf32, #tpu.memory_space<vmem>>, vector<1x8x96xf32>
    %82 = vector.shape_cast %81 : vector<1x8x96xf32> to vector<8x96xf32>
    %cst_31 = arith.constant dense<0.000000e+00> : vector<8x96xf32>
    %83 = tpu.matmul %79, %13, %cst_31 {dimension_numbers = #tpu.dot_dimension_numbers<[1], [0], [0], [1], [0, 0, 1, 1], [], []>, precision = #tpu.contract_precision<fp32>} : vector<8x32xf32>, vector<32x96xf32>, vector<8x96xf32> -> vector<8x96xf32>
    %84 = vector.extract_strided_slice %82 {offsets = [0, 0], sizes = [8, 32], strides = [1, 1]} : vector<8x96xf32> to vector<8x32xf32>
    %85 = vector.extract_strided_slice %83 {offsets = [0, 0], sizes = [8, 32], strides = [1, 1]} : vector<8x96xf32> to vector<8x32xf32>
    %86 = arith.addf %84, %85 : vector<8x32xf32>
    %87 = arith.negf %86 : vector<8x32xf32>
    %88 = math.exp %87 : vector<8x32xf32>
    %cst_32 = arith.constant 1.000000e+00 : f32
    %89 = vector.broadcast %cst_32 : f32 to vector<8x32xf32>
    %90 = arith.addf %89, %88 : vector<8x32xf32>
    %91 = arith.divf %89, %90 : vector<8x32xf32>
    %92 = vector.extract_strided_slice %82 {offsets = [0, 32], sizes = [8, 32], strides = [1, 1]} : vector<8x96xf32> to vector<8x32xf32>
    %93 = vector.extract_strided_slice %83 {offsets = [0, 32], sizes = [8, 32], strides = [1, 1]} : vector<8x96xf32> to vector<8x32xf32>
    %94 = arith.addf %92, %93 : vector<8x32xf32>
    %95 = arith.negf %94 : vector<8x32xf32>
    %96 = math.exp %95 : vector<8x32xf32>
    %cst_33 = arith.constant 1.000000e+00 : f32
    %97 = vector.broadcast %cst_33 : f32 to vector<8x32xf32>
    %98 = arith.addf %97, %96 : vector<8x32xf32>
    %99 = arith.divf %97, %98 : vector<8x32xf32>
    %100 = vector.extract_strided_slice %82 {offsets = [0, 64], sizes = [8, 32], strides = [1, 1]} : vector<8x96xf32> to vector<8x32xf32>
    %101 = vector.extract_strided_slice %83 {offsets = [0, 64], sizes = [8, 32], strides = [1, 1]} : vector<8x96xf32> to vector<8x32xf32>
    %102 = vector.broadcast %14 : vector<1x32xf32> to vector<8x32xf32>
    %103 = arith.addf %101, %102 : vector<8x32xf32>
    %104 = arith.mulf %91, %103 : vector<8x32xf32>
    %105 = arith.addf %100, %104 : vector<8x32xf32>
    %106 = math.tanh %105 : vector<8x32xf32>
    %cst_34 = arith.constant 1.000000e+00 : f32
    %107 = vector.broadcast %cst_34 : f32 to vector<8x32xf32>
    %108 = arith.subf %107, %99 : vector<8x32xf32>
    %109 = arith.mulf %108, %106 : vector<8x32xf32>
    %110 = arith.mulf %99, %79 : vector<8x32xf32>
    %111 = arith.addf %109, %110 : vector<8x32xf32>
    %c3_i32 = arith.constant 3 : i32
    %112 = arith.index_cast %c3_i32 : i32 to index
    %c0_35 = arith.constant 0 : index
    %c0_36 = arith.constant 0 : index
    %113 = vector.load %arg11[%112, %c0_35, %c0_36] : memref<8x8x96xf32, #tpu.memory_space<vmem>>, vector<1x8x96xf32>
    %114 = vector.shape_cast %113 : vector<1x8x96xf32> to vector<8x96xf32>
    %cst_37 = arith.constant dense<0.000000e+00> : vector<8x96xf32>
    %115 = tpu.matmul %111, %13, %cst_37 {dimension_numbers = #tpu.dot_dimension_numbers<[1], [0], [0], [1], [0, 0, 1, 1], [], []>, precision = #tpu.contract_precision<fp32>} : vector<8x32xf32>, vector<32x96xf32>, vector<8x96xf32> -> vector<8x96xf32>
    %116 = vector.extract_strided_slice %114 {offsets = [0, 0], sizes = [8, 32], strides = [1, 1]} : vector<8x96xf32> to vector<8x32xf32>
    %117 = vector.extract_strided_slice %115 {offsets = [0, 0], sizes = [8, 32], strides = [1, 1]} : vector<8x96xf32> to vector<8x32xf32>
    %118 = arith.addf %116, %117 : vector<8x32xf32>
    %119 = arith.negf %118 : vector<8x32xf32>
    %120 = math.exp %119 : vector<8x32xf32>
    %cst_38 = arith.constant 1.000000e+00 : f32
    %121 = vector.broadcast %cst_38 : f32 to vector<8x32xf32>
    %122 = arith.addf %121, %120 : vector<8x32xf32>
    %123 = arith.divf %121, %122 : vector<8x32xf32>
    %124 = vector.extract_strided_slice %114 {offsets = [0, 32], sizes = [8, 32], strides = [1, 1]} : vector<8x96xf32> to vector<8x32xf32>
    %125 = vector.extract_strided_slice %115 {offsets = [0, 32], sizes = [8, 32], strides = [1, 1]} : vector<8x96xf32> to vector<8x32xf32>
    %126 = arith.addf %124, %125 : vector<8x32xf32>
    %127 = arith.negf %126 : vector<8x32xf32>
    %128 = math.exp %127 : vector<8x32xf32>
    %cst_39 = arith.constant 1.000000e+00 : f32
    %129 = vector.broadcast %cst_39 : f32 to vector<8x32xf32>
    %130 = arith.addf %129, %128 : vector<8x32xf32>
    %131 = arith.divf %129, %130 : vector<8x32xf32>
    %132 = vector.extract_strided_slice %114 {offsets = [0, 64], sizes = [8, 32], strides = [1, 1]} : vector<8x96xf32> to vector<8x32xf32>
    %133 = vector.extract_strided_slice %115 {offsets = [0, 64], sizes = [8, 32], strides = [1, 1]} : vector<8x96xf32> to vector<8x32xf32>
    %134 = vector.broadcast %14 : vector<1x32xf32> to vector<8x32xf32>
    %135 = arith.addf %133, %134 : vector<8x32xf32>
    %136 = arith.mulf %123, %135 : vector<8x32xf32>
    %137 = arith.addf %132, %136 : vector<8x32xf32>
    %138 = math.tanh %137 : vector<8x32xf32>
    %cst_40 = arith.constant 1.000000e+00 : f32
    %139 = vector.broadcast %cst_40 : f32 to vector<8x32xf32>
    %140 = arith.subf %139, %131 : vector<8x32xf32>
    %141 = arith.mulf %140, %138 : vector<8x32xf32>
    %142 = arith.mulf %131, %111 : vector<8x32xf32>
    %143 = arith.addf %141, %142 : vector<8x32xf32>
    %c4_i32 = arith.constant 4 : i32
    %144 = arith.index_cast %c4_i32 : i32 to index
    %c0_41 = arith.constant 0 : index
    %c0_42 = arith.constant 0 : index
    %145 = vector.load %arg11[%144, %c0_41, %c0_42] : memref<8x8x96xf32, #tpu.memory_space<vmem>>, vector<1x8x96xf32>
    %146 = vector.shape_cast %145 : vector<1x8x96xf32> to vector<8x96xf32>
    %cst_43 = arith.constant dense<0.000000e+00> : vector<8x96xf32>
    %147 = tpu.matmul %143, %13, %cst_43 {dimension_numbers = #tpu.dot_dimension_numbers<[1], [0], [0], [1], [0, 0, 1, 1], [], []>, precision = #tpu.contract_precision<fp32>} : vector<8x32xf32>, vector<32x96xf32>, vector<8x96xf32> -> vector<8x96xf32>
    %148 = vector.extract_strided_slice %146 {offsets = [0, 0], sizes = [8, 32], strides = [1, 1]} : vector<8x96xf32> to vector<8x32xf32>
    %149 = vector.extract_strided_slice %147 {offsets = [0, 0], sizes = [8, 32], strides = [1, 1]} : vector<8x96xf32> to vector<8x32xf32>
    %150 = arith.addf %148, %149 : vector<8x32xf32>
    %151 = arith.negf %150 : vector<8x32xf32>
    %152 = math.exp %151 : vector<8x32xf32>
    %cst_44 = arith.constant 1.000000e+00 : f32
    %153 = vector.broadcast %cst_44 : f32 to vector<8x32xf32>
    %154 = arith.addf %153, %152 : vector<8x32xf32>
    %155 = arith.divf %153, %154 : vector<8x32xf32>
    %156 = vector.extract_strided_slice %146 {offsets = [0, 32], sizes = [8, 32], strides = [1, 1]} : vector<8x96xf32> to vector<8x32xf32>
    %157 = vector.extract_strided_slice %147 {offsets = [0, 32], sizes = [8, 32], strides = [1, 1]} : vector<8x96xf32> to vector<8x32xf32>
    %158 = arith.addf %156, %157 : vector<8x32xf32>
    %159 = arith.negf %158 : vector<8x32xf32>
    %160 = math.exp %159 : vector<8x32xf32>
    %cst_45 = arith.constant 1.000000e+00 : f32
    %161 = vector.broadcast %cst_45 : f32 to vector<8x32xf32>
    %162 = arith.addf %161, %160 : vector<8x32xf32>
    %163 = arith.divf %161, %162 : vector<8x32xf32>
    %164 = vector.extract_strided_slice %146 {offsets = [0, 64], sizes = [8, 32], strides = [1, 1]} : vector<8x96xf32> to vector<8x32xf32>
    %165 = vector.extract_strided_slice %147 {offsets = [0, 64], sizes = [8, 32], strides = [1, 1]} : vector<8x96xf32> to vector<8x32xf32>
    %166 = vector.broadcast %14 : vector<1x32xf32> to vector<8x32xf32>
    %167 = arith.addf %165, %166 : vector<8x32xf32>
    %168 = arith.mulf %155, %167 : vector<8x32xf32>
    %169 = arith.addf %164, %168 : vector<8x32xf32>
    %170 = math.tanh %169 : vector<8x32xf32>
    %cst_46 = arith.constant 1.000000e+00 : f32
    %171 = vector.broadcast %cst_46 : f32 to vector<8x32xf32>
    %172 = arith.subf %171, %163 : vector<8x32xf32>
    %173 = arith.mulf %172, %170 : vector<8x32xf32>
    %174 = arith.mulf %163, %143 : vector<8x32xf32>
    %175 = arith.addf %173, %174 : vector<8x32xf32>
    %c5_i32 = arith.constant 5 : i32
    %176 = arith.index_cast %c5_i32 : i32 to index
    %c0_47 = arith.constant 0 : index
    %c0_48 = arith.constant 0 : index
    %177 = vector.load %arg11[%176, %c0_47, %c0_48] : memref<8x8x96xf32, #tpu.memory_space<vmem>>, vector<1x8x96xf32>
    %178 = vector.shape_cast %177 : vector<1x8x96xf32> to vector<8x96xf32>
    %cst_49 = arith.constant dense<0.000000e+00> : vector<8x96xf32>
    %179 = tpu.matmul %175, %13, %cst_49 {dimension_numbers = #tpu.dot_dimension_numbers<[1], [0], [0], [1], [0, 0, 1, 1], [], []>, precision = #tpu.contract_precision<fp32>} : vector<8x32xf32>, vector<32x96xf32>, vector<8x96xf32> -> vector<8x96xf32>
    %180 = vector.extract_strided_slice %178 {offsets = [0, 0], sizes = [8, 32], strides = [1, 1]} : vector<8x96xf32> to vector<8x32xf32>
    %181 = vector.extract_strided_slice %179 {offsets = [0, 0], sizes = [8, 32], strides = [1, 1]} : vector<8x96xf32> to vector<8x32xf32>
    %182 = arith.addf %180, %181 : vector<8x32xf32>
    %183 = arith.negf %182 : vector<8x32xf32>
    %184 = math.exp %183 : vector<8x32xf32>
    %cst_50 = arith.constant 1.000000e+00 : f32
    %185 = vector.broadcast %cst_50 : f32 to vector<8x32xf32>
    %186 = arith.addf %185, %184 : vector<8x32xf32>
    %187 = arith.divf %185, %186 : vector<8x32xf32>
    %188 = vector.extract_strided_slice %178 {offsets = [0, 32], sizes = [8, 32], strides = [1, 1]} : vector<8x96xf32> to vector<8x32xf32>
    %189 = vector.extract_strided_slice %179 {offsets = [0, 32], sizes = [8, 32], strides = [1, 1]} : vector<8x96xf32> to vector<8x32xf32>
    %190 = arith.addf %188, %189 : vector<8x32xf32>
    %191 = arith.negf %190 : vector<8x32xf32>
    %192 = math.exp %191 : vector<8x32xf32>
    %cst_51 = arith.constant 1.000000e+00 : f32
    %193 = vector.broadcast %cst_51 : f32 to vector<8x32xf32>
    %194 = arith.addf %193, %192 : vector<8x32xf32>
    %195 = arith.divf %193, %194 : vector<8x32xf32>
    %196 = vector.extract_strided_slice %178 {offsets = [0, 64], sizes = [8, 32], strides = [1, 1]} : vector<8x96xf32> to vector<8x32xf32>
    %197 = vector.extract_strided_slice %179 {offsets = [0, 64], sizes = [8, 32], strides = [1, 1]} : vector<8x96xf32> to vector<8x32xf32>
    %198 = vector.broadcast %14 : vector<1x32xf32> to vector<8x32xf32>
    %199 = arith.addf %197, %198 : vector<8x32xf32>
    %200 = arith.mulf %187, %199 : vector<8x32xf32>
    %201 = arith.addf %196, %200 : vector<8x32xf32>
    %202 = math.tanh %201 : vector<8x32xf32>
    %cst_52 = arith.constant 1.000000e+00 : f32
    %203 = vector.broadcast %cst_52 : f32 to vector<8x32xf32>
    %204 = arith.subf %203, %195 : vector<8x32xf32>
    %205 = arith.mulf %204, %202 : vector<8x32xf32>
    %206 = arith.mulf %195, %175 : vector<8x32xf32>
    %207 = arith.addf %205, %206 : vector<8x32xf32>
    %c6_i32 = arith.constant 6 : i32
    %208 = arith.index_cast %c6_i32 : i32 to index
    %c0_53 = arith.constant 0 : index
    %c0_54 = arith.constant 0 : index
    %209 = vector.load %arg11[%208, %c0_53, %c0_54] : memref<8x8x96xf32, #tpu.memory_space<vmem>>, vector<1x8x96xf32>
    %210 = vector.shape_cast %209 : vector<1x8x96xf32> to vector<8x96xf32>
    %cst_55 = arith.constant dense<0.000000e+00> : vector<8x96xf32>
    %211 = tpu.matmul %207, %13, %cst_55 {dimension_numbers = #tpu.dot_dimension_numbers<[1], [0], [0], [1], [0, 0, 1, 1], [], []>, precision = #tpu.contract_precision<fp32>} : vector<8x32xf32>, vector<32x96xf32>, vector<8x96xf32> -> vector<8x96xf32>
    %212 = vector.extract_strided_slice %210 {offsets = [0, 0], sizes = [8, 32], strides = [1, 1]} : vector<8x96xf32> to vector<8x32xf32>
    %213 = vector.extract_strided_slice %211 {offsets = [0, 0], sizes = [8, 32], strides = [1, 1]} : vector<8x96xf32> to vector<8x32xf32>
    %214 = arith.addf %212, %213 : vector<8x32xf32>
    %215 = arith.negf %214 : vector<8x32xf32>
    %216 = math.exp %215 : vector<8x32xf32>
    %cst_56 = arith.constant 1.000000e+00 : f32
    %217 = vector.broadcast %cst_56 : f32 to vector<8x32xf32>
    %218 = arith.addf %217, %216 : vector<8x32xf32>
    %219 = arith.divf %217, %218 : vector<8x32xf32>
    %220 = vector.extract_strided_slice %210 {offsets = [0, 32], sizes = [8, 32], strides = [1, 1]} : vector<8x96xf32> to vector<8x32xf32>
    %221 = vector.extract_strided_slice %211 {offsets = [0, 32], sizes = [8, 32], strides = [1, 1]} : vector<8x96xf32> to vector<8x32xf32>
    %222 = arith.addf %220, %221 : vector<8x32xf32>
    %223 = arith.negf %222 : vector<8x32xf32>
    %224 = math.exp %223 : vector<8x32xf32>
    %cst_57 = arith.constant 1.000000e+00 : f32
    %225 = vector.broadcast %cst_57 : f32 to vector<8x32xf32>
    %226 = arith.addf %225, %224 : vector<8x32xf32>
    %227 = arith.divf %225, %226 : vector<8x32xf32>
    %228 = vector.extract_strided_slice %210 {offsets = [0, 64], sizes = [8, 32], strides = [1, 1]} : vector<8x96xf32> to vector<8x32xf32>
    %229 = vector.extract_strided_slice %211 {offsets = [0, 64], sizes = [8, 32], strides = [1, 1]} : vector<8x96xf32> to vector<8x32xf32>
    %230 = vector.broadcast %14 : vector<1x32xf32> to vector<8x32xf32>
    %231 = arith.addf %229, %230 : vector<8x32xf32>
    %232 = arith.mulf %219, %231 : vector<8x32xf32>
    %233 = arith.addf %228, %232 : vector<8x32xf32>
    %234 = math.tanh %233 : vector<8x32xf32>
    %cst_58 = arith.constant 1.000000e+00 : f32
    %235 = vector.broadcast %cst_58 : f32 to vector<8x32xf32>
    %236 = arith.subf %235, %227 : vector<8x32xf32>
    %237 = arith.mulf %236, %234 : vector<8x32xf32>
    %238 = arith.mulf %227, %207 : vector<8x32xf32>
    %239 = arith.addf %237, %238 : vector<8x32xf32>
    %c7_i32 = arith.constant 7 : i32
    %240 = arith.index_cast %c7_i32 : i32 to index
    %c0_59 = arith.constant 0 : index
    %c0_60 = arith.constant 0 : index
    %241 = vector.load %arg11[%240, %c0_59, %c0_60] : memref<8x8x96xf32, #tpu.memory_space<vmem>>, vector<1x8x96xf32>
    %242 = vector.shape_cast %241 : vector<1x8x96xf32> to vector<8x96xf32>
    %cst_61 = arith.constant dense<0.000000e+00> : vector<8x96xf32>
    %243 = tpu.matmul %239, %13, %cst_61 {dimension_numbers = #tpu.dot_dimension_numbers<[1], [0], [0], [1], [0, 0, 1, 1], [], []>, precision = #tpu.contract_precision<fp32>} : vector<8x32xf32>, vector<32x96xf32>, vector<8x96xf32> -> vector<8x96xf32>
    %244 = vector.extract_strided_slice %242 {offsets = [0, 0], sizes = [8, 32], strides = [1, 1]} : vector<8x96xf32> to vector<8x32xf32>
    %245 = vector.extract_strided_slice %243 {offsets = [0, 0], sizes = [8, 32], strides = [1, 1]} : vector<8x96xf32> to vector<8x32xf32>
    %246 = arith.addf %244, %245 : vector<8x32xf32>
    %247 = arith.negf %246 : vector<8x32xf32>
    %248 = math.exp %247 : vector<8x32xf32>
    %cst_62 = arith.constant 1.000000e+00 : f32
    %249 = vector.broadcast %cst_62 : f32 to vector<8x32xf32>
    %250 = arith.addf %249, %248 : vector<8x32xf32>
    %251 = arith.divf %249, %250 : vector<8x32xf32>
    %252 = vector.extract_strided_slice %242 {offsets = [0, 32], sizes = [8, 32], strides = [1, 1]} : vector<8x96xf32> to vector<8x32xf32>
    %253 = vector.extract_strided_slice %243 {offsets = [0, 32], sizes = [8, 32], strides = [1, 1]} : vector<8x96xf32> to vector<8x32xf32>
    %254 = arith.addf %252, %253 : vector<8x32xf32>
    %255 = arith.negf %254 : vector<8x32xf32>
    %256 = math.exp %255 : vector<8x32xf32>
    %cst_63 = arith.constant 1.000000e+00 : f32
    %257 = vector.broadcast %cst_63 : f32 to vector<8x32xf32>
    %258 = arith.addf %257, %256 : vector<8x32xf32>
    %259 = arith.divf %257, %258 : vector<8x32xf32>
    %260 = vector.extract_strided_slice %242 {offsets = [0, 64], sizes = [8, 32], strides = [1, 1]} : vector<8x96xf32> to vector<8x32xf32>
    %261 = vector.extract_strided_slice %243 {offsets = [0, 64], sizes = [8, 32], strides = [1, 1]} : vector<8x96xf32> to vector<8x32xf32>
    %262 = vector.broadcast %14 : vector<1x32xf32> to vector<8x32xf32>
    %263 = arith.addf %261, %262 : vector<8x32xf32>
    %264 = arith.mulf %251, %263 : vector<8x32xf32>
    %265 = arith.addf %260, %264 : vector<8x32xf32>
    %266 = math.tanh %265 : vector<8x32xf32>
    %cst_64 = arith.constant 1.000000e+00 : f32
    %267 = vector.broadcast %cst_64 : f32 to vector<8x32xf32>
    %268 = arith.subf %267, %259 : vector<8x32xf32>
    %269 = arith.mulf %268, %266 : vector<8x32xf32>
    %270 = arith.mulf %259, %239 : vector<8x32xf32>
    %271 = arith.addf %269, %270 : vector<8x32xf32>
    %c8_i32 = arith.constant 8 : i32
    %c0_65 = arith.constant 0 : index
    %c0_66 = arith.constant 0 : index
    %272 = vector.load %arg10[%c0_65, %c0_66] : memref<8x32xf32, #tpu.memory_space<vmem>>, vector<8x32xf32>
    tpu.vector_store %arg10[%c0_65, %c0_66], %271 {strides = array<i32>} : memref<8x32xf32, #tpu.memory_space<vmem>>, vector<8x32xf32>,
    %c0_i32_67 = arith.constant 0 : i32
    %273 = arith.cmpi eq, %arg1, %c0_i32_67 : i32
    %274 = arith.extui %273 : i1 to i32
    %c0_i32_68 = arith.constant 0 : i32
    %275 = arith.cmpi ne, %274, %c0_i32_68 : i32
    scf.if %275 {
      %c0_69 = arith.constant 0 : index
      %c0_70 = arith.constant 0 : index
      %276 = vector.load %arg7[%c0_69, %c0_70] : memref<1x32xf32, #tpu.memory_space<vmem>>, vector<1x32xf32>
      %277 = vector.broadcast %276 : vector<1x32xf32> to vector<8x32xf32>
      %278 = arith.mulf %271, %277 : vector<8x32xf32>
      %cst_71 = arith.constant dense<0.000000e+00> : vector<8xf32>
      %279 = vector.multi_reduction <add>, %278, %cst_71 [1] : vector<8x32xf32> to vector<8xf32>
      %280 = vector.shape_cast %279 : vector<8xf32> to vector<8x1xf32>
      %c0_72 = arith.constant 0 : index
      %c0_73 = arith.constant 0 : index
      %281 = vector.load %arg8[%c0_72, %c0_73] : memref<1x1xf32, #tpu.memory_space<vmem>>, vector<1x1xf32>
      %282 = vector.broadcast %281 : vector<1x1xf32> to vector<8x1xf32>
      %283 = arith.addf %280, %282 : vector<8x1xf32>
      %c0_74 = arith.constant 0 : index
      %c0_75 = arith.constant 0 : index
      %284 = vector.load %arg9[%c0_74, %c0_75] : memref<8x1xf32, #tpu.memory_space<vmem>>, vector<8x1xf32>
      tpu.vector_store %arg9[%c0_74, %c0_75], %283 {strides = array<i32>} : memref<8x1xf32, #tpu.memory_space<vmem>>, vector<8x1xf32>,
    } else {
    }
    return
  }
  func.func @transform_0(%arg0: i32, %arg1: i32) -> (i32, i32, i32) {
    %c0_i32 = arith.constant 0 : i32
    %c0_i32_0 = arith.constant 0 : i32
    return %arg0, %arg1, %c0_i32 : i32, i32, i32
  }
  func.func @transform_1(%arg0: i32, %arg1: i32) -> (i32, i32) {
    %c0_i32 = arith.constant 0 : i32
    %c0_i32_0 = arith.constant 0 : i32
    %c0_i32_1 = arith.constant 0 : i32
    return %c0_i32, %c0_i32_0 : i32, i32
  }
  func.func @transform_2(%arg0: i32, %arg1: i32) -> (i32, i32) {
    %c0_i32 = arith.constant 0 : i32
    %c0_i32_0 = arith.constant 0 : i32
    %c0_i32_1 = arith.constant 0 : i32
    return %c0_i32, %c0_i32_0 : i32, i32
  }
  func.func @transform_3(%arg0: i32, %arg1: i32) -> (i32, i32) {
    %c0_i32 = arith.constant 0 : i32
    %c0_i32_0 = arith.constant 0 : i32
    %c0_i32_1 = arith.constant 0 : i32
    return %c0_i32, %c0_i32_0 : i32, i32
  }
  func.func @transform_4(%arg0: i32, %arg1: i32) -> (i32, i32) {
    %c0_i32 = arith.constant 0 : i32
    %c0_i32_0 = arith.constant 0 : i32
    %c0_i32_1 = arith.constant 0 : i32
    return %c0_i32, %c0_i32_0 : i32, i32
  }
  func.func @transform_5(%arg0: i32, %arg1: i32) -> (i32, i32) {
    %c0_i32 = arith.constant 0 : i32
    %c0_i32_0 = arith.constant 0 : i32
    %c0_i32_1 = arith.constant 0 : i32
    return %c0_i32, %c0_i32_0 : i32, i32
  }
  func.func @transform_6(%arg0: i32, %arg1: i32) -> (i32, i32) {
    %c0_i32 = arith.constant 0 : i32
    %c0_i32_0 = arith.constant 0 : i32
    %c0_i32_1 = arith.constant 0 : i32
    return %c0_i32, %c0_i32_0 : i32, i32
  }
  func.func @transform_7(%arg0: i32, %arg1: i32) -> (i32, i32) {
    %c0_i32 = arith.constant 0 : i32
    %c0_i32_0 = arith.constant 0 : i32
    return %arg0, %c0_i32 : i32, i32
  }
}

</mosaic_0001>

<bundles_post_ra>
// kernel: tpu_custom_call.1
= control target key start
LH: loop header
LB: loop body
LE: loop exit
PB: predicated region body
PF: predicated region fallthrough
CT: control target
= control target key end

     0   :  { %s7645_s0 = inlined_call_operand.hbm [shape: f32[8,8,32], index: 0, kind: input, shape index: {}]   ;;  %s7646_s1 = inlined_call_operand.hbm [shape: f32[32,96], index: 1, kind: input, shape index: {}]   ;;  %s7647_s2 = inlined_call_operand.hbm [shape: f32[32,96], index: 2, kind: input, shape index: {}]   ;;  %s7648_s3 = inlined_call_operand.vmem [shape: f32[1,96], index: 3, kind: input, shape index: {}]   ;;  %s7649_s4 = inlined_call_operand.vmem [shape: f32[1,32], index: 4, kind: input, shape index: {}]   ;;  %s7650_s5 = inlined_call_operand.vmem [shape: f32[1,32], index: 5, kind: input, shape index: {}]   ;;  %s7651_s6 = inlined_call_operand.<no memory space> [shape: f32[1,1], index: 6, kind: input, shape index: {}]   ;;  %s7652_s7 = inlined_call_operand.vmem [shape: f32[8,1], index: 7, kind: output, shape index: {}]  }
   0x1   :  { %v12_v0 = vstv %s7651_s6 }
   0x2   :  { %13 = vst [vmem:[#allocation4] sm:$0x1] %v12_v0 }
   0x3   :  { %14 = vsyncpa [#allocation6], 0 }
   0x4   :  { %15 = vsyncpa [#allocation8], 0  ;;  %s6836_s26 = smov [#allocation7]   ;;  %s6837_s28 = smov [#allocation5]  }
   0x5   :  { %s33_s27 = sshll.u32 %s6836_s26, 4  ;;  %s21_s29 = sshll.u32 %s6837_s28, 4  ;;  %s34_s27 = int_to_ptr.vmem [resolvable:$true] %s33_s27  ;;  %s6892_s29 = int_to_ptr.vmem [resolvable:$true] %s21_s29 }
   0x6   :  { %s6766_s9 = scalar_lea.hbm %s7646_s1, 512 }
   0x7   :  { %p6767_p0 = scmp.ne.s32.totalorder %s7646_s1, %s6766_s9  ;;  %p6770_p1 = scmp.lt.u32.totalorder %s6766_s9, %s7646_s1 }
   0x9   :  { %p6772_p2 = pnand %p6770_p1, %p6767_p0 }
   0xb   :  { %6775 = shalt.err (!%p6772_p2)
}
   0xc   :  { %s6776_s13 = scalar_lea.vmem %s34_s27, 512  ;;  %p6781_p4 = scmp.lt.s32.totalorder %s34_s27, %s34_s27 }
   0xd   :  { %p6777_p3 = scmp.ne.s32.totalorder %s34_s27, %s6776_s13  ;;  %p6782_p5 = scmp.lt.s32.totalorder %s6776_s13, %s6776_s13 }
   0xf   :  { %p6783_p6 = por %p6782_p5, %p6781_p4 }
  0x11   :  { %p6784_p7 = pnand %p6783_p6, %p6777_p3 }
  0x13   :  { %6787 = shalt.err (!%p6784_p7)
}
  0x14   :  { %s6838_s14 = smov 128   ;;  %s6839_s15 = smov 8  }
  0x15   :  { %39 = dma.hbm_to_vmem [thread:$0]  %s7646_s1, 512, %s34_s27, [#allocation8], %s6838_s14, %s6838_s14, %s6839_s15  }
  0x16   :  { %s6788_s20 = scalar_lea.hbm %s7645_s0, 1024 }
  0x17   :  { %p6789_p8 = scmp.ne.s32.totalorder %s7645_s0, %s6788_s20  ;;  %p6792_p9 = scmp.lt.u32.totalorder %s6788_s20, %s7645_s0 }
  0x19   :  { %p6794_p10 = pnand %p6792_p9, %p6789_p8 }
  0x1b   :  { %6797 = shalt.err (!%p6794_p10)
}
  0x1c   :  { %s6798_s25 = scalar_lea.vmem %s6892_s29, 1024  ;;  %p6803_p12 = scmp.lt.s32.totalorder %s6892_s29, %s6892_s29 }
  0x1d   :  { %p6799_p11 = scmp.ne.s32.totalorder %s6892_s29, %s6798_s25  ;;  %p6804_p13 = scmp.lt.s32.totalorder %s6798_s25, %s6798_s25 }
  0x1f   :  { %p6805_p0 = por %p6804_p13, %p6803_p12 }
  0x21   :  { %p6806_p1 = pnand %p6805_p0, %p6799_p11 }
  0x23   :  { %6809 = shalt.err (!%p6806_p1)
}
  0x24   :  { %27 = dma.hbm_to_vmem [thread:$0]  %s7645_s0, 1024, %s6892_s29, [#allocation6], %s6838_s14, %s6838_s14, %s6839_s15  }
  0x25   :  { %s6840_s27 = smov [#allocation9]   ;;  %s6810_s9 = scalar_lea.hbm %s7647_s2, 512 }
  0x26   :  { %s45_s28 = sshll.u32 %s6840_s27, 4  ;;  %p6811_p2 = scmp.ne.s32.totalorder %s7647_s2, %s6810_s9  ;;  %s46_s28 = int_to_ptr.vmem [resolvable:$true] %s45_s28 }
  0x27   :  { %p6814_p3 = scmp.lt.u32.totalorder %s6810_s9, %s7647_s2 }
  0x29   :  { %p6816_p4 = pnand %p6814_p3, %p6811_p2 }
  0x2b   :  { %6819 = shalt.err (!%p6816_p4)
}
  0x2c   :  { %s6820_s13 = scalar_lea.vmem %s46_s28, 512  ;;  %p6825_p6 = scmp.lt.s32.totalorder %s46_s28, %s46_s28 }
  0x2d   :  { %p6821_p5 = scmp.ne.s32.totalorder %s46_s28, %s6820_s13  ;;  %p6826_p7 = scmp.lt.s32.totalorder %s6820_s13, %s6820_s13 }
  0x2f   :  { %p6827_p8 = por %p6826_p7, %p6825_p6 }
  0x31   :  { %p6828_p9 = pnand %p6827_p8, %p6821_p5 }
  0x33   :  { %6831 = shalt.err (!%p6828_p9)
}
  0x34   :  { %51 = dma.hbm_to_vmem [thread:$0]  %s7647_s2, 512, %s46_s28, [#allocation8], %s6838_s14, %s6838_s14, %s6839_s15  }
  0x35   :  { %6832 = dma.done.wait [#allocation6], 1024  }
  0x36   :  { %6833 = vsyncadd [#allocation6], 4294966272 }
  0x37   :  { %6834 = dma.done.wait [#allocation8], 1024  }
  0x38   :  { %6835 = vsyncadd [#allocation8], 4294966272  ;;  %vm73_vm0 = vcmask 261120   ;;  %v6841_v1 = vmov 0.0|0.0   ;;  %vm6842_vm1 = vmmov 0   ;;  %v6843_v2 = vmov 0.0  }
  0x39   :  { %6277 = vmatprep.subr.bf16.mxu1 %v6841_v1  ;;  %5709 = vmatprep.mubr.msk.f32.mxu1 %vm6842_vm1, %v6843_v2  ;;  %74 = vst.msk [vmem:[#allocation2] sm:$0xff] %vm73_vm0, %v6843_v2  ;;  %v88_v3 = vlaneseq  ;;  %v6844_v4 = vmov 1983009808   ;;  %v6845_v6 = vmov 1934713408   ;;  %v1050_v11 = vld [vmem:[#allocation9] sm:$0xff] }
  0x3a   :  { %v86_v5 = vunpack.c.l.s4 %v6844_v4  ;;  %v150_v7 = vunpack.c.l.s4 %v6845_v6  ;;  %v1051_v12 = vld [vmem:[#allocation9 + $0x8] sm:$0xff]  ;;  %v1052_v13 = vld [vmem:[#allocation9 + $0x10] sm:$0xff]  ;;  %v1061_v14 = vand.u32 4294901760, %v1050_v11  ;;  %v1053_v16 = vld [vmem:[#allocation9 + $0x18] sm:$0xff]  ;;  %s6846_s15 = smov 64   ;;  %vm1041_vm2 = vcmask 785408  }
  0x3b   :  { %v89_v9 = vshrl.u32 %v88_v3, 7  ;;  %v1064_v15 = vand.u32 4294901760, %v1051_v12  ;;  %v1067_v17 = vand.u32 4294901760, %v1052_v13  ;;  %v6951_v19 = vld [vmem:[#allocation7] sm:$0xff]  ;;  %v1070_v21 = vand.u32 4294901760, %v1053_v16  ;;  %v6957_v23 = vld [vmem:[#allocation7 + $0x8] sm:$0xff] }
  0x3c   :  { %v87_v8 = vunpack.c.0.s8 %v86_v5  ;;  %v151_v10 = vunpack.c.0.s8 %v150_v7  ;;  %v256_v24 = vand.u32 4294901760, %v6951_v19  ;;  %v6960_v25 = vld [vmem:[#allocation7 + $0x10] sm:$0xff]  ;;  %v6962_v26 = vld [vmem:[#allocation7 + $0x18] sm:$0xff]  ;;  %v6970_v30 = vsub.f32 %v1050_v11, %v1061_v14 }
  0x3d   :  { %v6966_v28 = vpack.c.bf16 %v1064_v15, %v1061_v14  ;;  %v6972_v31 = vsub.f32 %v1051_v12, %v1064_v15  ;;  %v6974_v32 = vpack.c.bf16 %v1070_v21, %v1067_v17  ;;  %v259_v33 = vand.u32 4294901760, %v6957_v23  ;;  %v6706_v44 = vld [vmem:[#allocation5] ss:$16 sps:$4 sm:$0xff]   ;;  %v6709_v49 = vld [vmem:[#allocation5 + $0x8] ss:$16 sps:$4 sm:$0xff]  }
  0x3e   :  { %v6953_v20 = vsub.s32 %v87_v8, %v89_v9  ;;  %v6964_v27 = vsub.s32 %v151_v10, %v89_v9  ;;  %v6977_v34 = vsub.f32 %v1052_v13, %v1067_v17  ;;  %v6979_v35 = vsub.f32 %v1053_v16, %v1070_v21  ;;  %v6708_v53 = vld [vmem:[#allocation5 + $0x4] ss:$16 sps:$4 sm:$0xff]   ;;  %v6711_v55 = vld [vmem:[#allocation5 + $0xc] ss:$16 sps:$4 sm:$0xff]   ;;  %v6712_v56 = vld [vmem:[#allocation5 + $0x20] ss:$16 sps:$4 sm:$0xff]  }
  0x3f   :  { %6279 = vmatpush3.bf16.msra.mxu1 %v6966_v28  ;;  %v1142_v37 = vand.u32 4294901760, %v6970_v30  ;;  %v1149_v38 = vand.u32 4294901760, %v6972_v31  ;;  %v262_v39 = vand.u32 4294901760, %v6960_v25  ;;  %v6993_v40 = vpack.c.bf16 %v259_v33, %v256_v24  ;;  %v6714_v61 = vld [vmem:[#allocation5 + $0x24] ss:$16 sps:$4 sm:$0xff]  }
  0x40   :  { %v6949_v18 = vld [vmem:[#allocation2] sm:$0xff]  ;;  %6280 = vmatprep.subr.bf16.mxu1 %v6841_v1  ;;  %v1156_v41 = vand.u32 4294901760, %v6977_v34  ;;  %v1163_v42 = vand.u32 4294901760, %v6979_v35  ;;  %v265_v43 = vand.u32 4294901760, %v6962_v26  ;;  %v7007_v48 = vpack.c.bf16 %v6972_v31, %v6970_v30 }
  0x41   :  { %v1058_v22 = vsel %vm73_vm0, %v6949_v18, 0  ;;  %v1143_v46 = vsub.f32 %v6970_v30, %v1142_v37  ;;  %v1150_v47 = vsub.f32 %v6972_v31, %v1149_v38  ;;  %6230 = vmatprep.subr.bf16.mxu0 %v6993_v40  ;;  %v91_v54 = vrot.slane %v6706_v44, %v6953_v20  ;;  %v6715_v62 = vld [vmem:[#allocation5 + $0x28] ss:$16 sps:$4 sm:$0xff]   ;;  %v6717_v4 = vld [vmem:[#allocation5 + $0x2c] ss:$16 sps:$4 sm:$0xff]  }
  0x42   :  { %v6968_v29 = vand.u32 4294901760, %v1058_v22  ;;  %v1157_v50 = vsub.f32 %v6977_v34, %v1156_v41  ;;  %v1164_v51 = vsub.f32 %v6979_v35, %v1163_v42  ;;  %v7020_v52 = vpack.c.bf16 %v265_v43, %v262_v39  ;;  %6232 = vmatpush3.bf16.msra.mxu0 %v6993_v40  ;;  %v5259_v6 = vld [vmem:[%s7649_s4] ss:$0 sm:$0xff]  ;;  %s6847_s4 = smov 32  }
  0x43   :  { %6282 = vmatpush3.bf16.msra.mxu1 %v6974_v32  ;;  %v1144_v58 = vand.u32 4294901760, %v1143_v46  ;;  %v1151_v59 = vand.u32 4294901760, %v1150_v47  ;;  %v107_v60 = vrot.slane %v6709_v49, %v6953_v20  ;;  %v123_v3 = vrot.slane %v6712_v56, %v6953_v20  ;;  %1557 = vrot.lane.b32.xlu0 %v5259_v6, %s6846_s15 }
  0x44   :  { %v6983_v36 = vsub.f32 %v1058_v22, %v6968_v29  ;;  %6283 = vmatprep.subr.bf16.mxu1 %v6841_v1  ;;  %v1158_v63 = vand.u32 4294901760, %v1157_v50  ;;  %v1165_v0 = vand.u32 4294901760, %v1164_v51  ;;  %6234 = vmatprep.subr.bf16.mxu0 %v7020_v52  ;;  %v7034_v5 = vpack.c.bf16 %v6979_v35, %v6977_v34 }
  0x45   :  { %v7039_v8 = vpack.c.bf16 %v1151_v59, %v1144_v58  ;;  %v139_v9 = vrot.slane %v6715_v62, %v6953_v20  ;;  %v147_v10 = vcombine.low %v91_v54, %v107_v60  ;;  %v148_v12 = vcombine.high %v91_v54, %v107_v60 }
  0x46   :  { %v1131_v45 = vand.u32 4294901760, %v6983_v36  ;;  %v7043_v11 = vpack.c.bf16 %v1165_v0, %v1158_v63  ;;  %v7046_v13 = vrot.slane %v6708_v53, %v6953_v20  ;;  %v114_v14 = vrot.slane %v6711_v55, %v6953_v20  ;;  %6236 = vmatpush3.bf16.msra.mxu0 %v7020_v52 }
  0x47   :  { %v155_v15 = vrot.slane %v147_v10, %v6964_v27  ;;  %v179_v16 = vcombine.low %v123_v3, %v139_v9  ;;  %v180_v17 = vcombine.high %v123_v3, %v139_v9  ;;  %v162_v21 = vrot.slane %v148_v12, %v6964_v27 }
  0x48   :  { %v1132_v57 = vsub.f32 %v6983_v36, %v1131_v45  ;;  %v7056_v22 = vrot.slane %v6714_v61, %v6953_v20  ;;  %v146_v44 = vrot.slane %v6717_v4, %v6953_v20  ;;  %v163_v49 = vcombine.low %v7046_v13, %v114_v14 }
  0x49   :  { %v187_v46 = vrot.slane %v179_v16, %v6964_v27  ;;  %v194_v47 = vrot.slane %v180_v17, %v6964_v27  ;;  %v7066_v50 = vsub.f32 %v6951_v19, %v256_v24  ;;  %v7072_v53 = vsub.f32 %v6957_v23, %v259_v33 }
  0x4a   :  { %v1133_v7 = vand.u32 4294901760, %v1132_v57  ;;  %v195_v51 = vcombine.low %v7056_v22, %v146_v44  ;;  %v164_v20 = vcombine.high %v7046_v13, %v114_v14  ;;  %v196_v54 = vcombine.high %v7056_v22, %v146_v44 }
  0x4b   :  { %v211_v55 = vcombine.low %v155_v15, %v187_v46  ;;  %v212_v56 = vcombine.high %v155_v15, %v187_v46  ;;  %v213_v57 = vcombine.low %v162_v21, %v194_v47  ;;  %v214_v58 = vcombine.high %v162_v21, %v194_v47 }
  0x4c   :  { %5710 = vmatmul.mubr.f32.vlgmr.msra.gmra.mrb[0].mxu1 %v1133_v7  ;;  %v171_v19 = vrot.slane %v163_v49, %v6964_v27  ;;  %v203_v24 = vrot.slane %v195_v51, %v6964_v27  ;;  %v407_v59 = vand.u32 4294901760, %v7066_v50  ;;  %v414_v60 = vand.u32 4294901760, %v7072_v53 }
  0x4d   :  { %6285 = vmatpush3.bf16.msra.mxu1 %v7039_v8  ;;  %5720 = vmatprep.mubr.msk.f32.mxu1 %vm6842_vm1, %v6843_v2  ;;  %v232_v23 = vsel %vm73_vm0, %v211_v55, 0  ;;  %v235_v33 = vsel %vm73_vm0, %v212_v56, 0  ;;  %v238_v61 = vsel %vm73_vm0, %v213_v57, 0  ;;  %v241_v62 = vsel %vm73_vm0, %v214_v58, 0 }
  0x4e   :  { %6286 = vmatprep.subr.bf16.mxu1 %v6841_v1  ;;  %v7086_v63 = vand.u32 4294901760, %v232_v23  ;;  %v7088_v0 = vand.u32 4294901760, %v235_v33  ;;  %v7090_v3 = vand.u32 4294901760, %v238_v61  ;;  %v7092_v4 = vand.u32 4294901760, %v241_v62 }
  0x4f   :  { %v215_v6 = vcombine.low %v171_v19, %v203_v24  ;;  %v216_v7 = vcombine.high %v171_v19, %v203_v24  ;;  %v408_v9 = vsub.f32 %v7066_v50, %v407_v59  ;;  %v415_v10 = vsub.f32 %v7072_v53, %v414_v60 }
  0x50   :  { %v7103_v12 = vsub.f32 %v232_v23, %v7086_v63  ;;  %v7106_v13 = vsub.f32 %v235_v33, %v7088_v0  ;;  %v7109_v14 = vsub.f32 %v238_v61, %v7090_v3  ;;  %v7112_v15 = vsub.f32 %v241_v62, %v7092_v4 }
  0x51   :  { %6288 = vmatpush3.bf16.msra.mxu1 %v7043_v11  ;;  %v244_v16 = vsel %vm73_vm0, %v215_v6, 0  ;;  %v247_v17 = vsel %vm73_vm0, %v216_v7, 0  ;;  %v409_v21 = vand.u32 4294901760, %v408_v9  ;;  %v416_v22 = vand.u32 4294901760, %v415_v10 }
  0x52   :  { %6289 = vmatprep.subr.bf16.mxu1 %v6841_v1  ;;  %v326_v44 = vand.u32 4294901760, %v7103_v12  ;;  %v336_v46 = vand.u32 4294901760, %v7106_v13  ;;  %v346_v47 = vand.u32 4294901760, %v7109_v14  ;;  %v356_v49 = vand.u32 4294901760, %v7112_v15 }
  0x53   :  { %v7123_v51 = vand.u32 4294901760, %v244_v16  ;;  %v7125_v55 = vand.u32 4294901760, %v247_v17  ;;  %v6237_v56 = vpack.c.bf16 %v416_v22, %v409_v21  ;;  %v178_v57 = vrot.slane %v164_v20, %v6964_v27 }
  0x54   :  { %5721 = vmatmul.mubr.f32.vlgmr.msra.gmra.mrb[0].mxu1 %v6968_v29  ;;  %v327_v58 = vsub.f32 %v7103_v12, %v326_v44  ;;  %v337_v19 = vsub.f32 %v7106_v13, %v336_v46  ;;  %v347_v24 = vsub.f32 %v7109_v14, %v346_v47  ;;  %v357_v23 = vsub.f32 %v7112_v15, %v356_v49 }
  0x55   :  { %6291 = vmatpush3.bf16.msra.mxu1 %v7007_v48  ;;  %5731 = vmatprep.mubr.msk.f32.mxu1 %vm6842_vm1, %v6843_v2  ;;  %v7143_v20 = vsub.f32 %v244_v16, %v7123_v51  ;;  %v7146_v33 = vsub.f32 %v247_v17, %v7125_v55  ;;  %v210_v61 = vrot.slane %v196_v54, %v6964_v27  ;;  %vm5249_vm3 = vcmask 7168  }
  0x56   :  { %6292 = vmatprep.subr.bf16.mxu1 %v6841_v1  ;;  %6238 = vmatprep.subr.bf16.mxu0 %v6237_v56  ;;  %v328_v62 = vand.u32 4294901760, %v327_v58  ;;  %v338_v6 = vand.u32 4294901760, %v337_v19  ;;  %v348_v7 = vand.u32 4294901760, %v347_v24  ;;  %v358_v16 = vand.u32 4294901760, %v357_v23 }
  0x57   :  { %v366_v9 = vand.u32 4294901760, %v7143_v20  ;;  %v376_v10 = vand.u32 4294901760, %v7146_v33  ;;  %v217_v21 = vcombine.low %v178_v57, %v210_v61  ;;  %v218_v22 = vcombine.high %v178_v57, %v210_v61 }
  0x58   :  { %5589 = vmatprep.mubr.f32.mxu0 %v328_v62  ;;  %v7156_v17 = vsub.f32 %v6960_v25, %v262_v39  ;;  %v7161_v27 = vsub.f32 %v6962_v26, %v265_v43  ;;  %v7184_v23 = vpack.c.bf16 %v1149_v38, %v1142_v37 }
  0x59   :  { %6294 = vmatpush3.bf16.msra.mxu1 %v7034_v5  ;;  %5590 = vmatmul.mubr.f32.vlgmr.msra.gmra.mrb[0].mxu0 %v338_v6  ;;  %v367_v54 = vsub.f32 %v7143_v20, %v366_v9  ;;  %v377_v57 = vsub.f32 %v7146_v33, %v376_v10  ;;  %v250_v58 = vsel %vm73_vm0, %v217_v21, 0  ;;  %v253_v25 = vsel %vm73_vm0, %v218_v22, 0 }
  0x5a   :  { %6295 = vmatprep.subr.bf16.mxu1 %v6841_v1  ;;  %5592 = vmatprep.mubr.f32.mxu0 %v348_v7  ;;  %v7172_v39 = vand.u32 4294901760, %v250_v58  ;;  %v7174_v26 = vand.u32 4294901760, %v253_v25  ;;  %v421_v43 = vand.u32 4294901760, %v7156_v17  ;;  %v428_v19 = vand.u32 4294901760, %v7161_v27 }
  0x5b   :  { %6240 = vmatpush3.bf16.msra.mxu0 %v6237_v56  ;;  %v368_v24 = vand.u32 4294901760, %v367_v54  ;;  %v378_v31 = vand.u32 4294901760, %v377_v57  ;;  %v7208_v21 = vpack.c.bf16 %v1163_v42, %v1156_v41  ;;  %v6249_v41 = vpack.c.bf16 %v7161_v27, %v7156_v17 }
  0x5c   :  { %5732 = vmatmul.mubr.f32.vlgmr.msra.gmra.mrb[0].mxu1 %v6983_v36  ;;  %v7188_v56 = vsub.f32 %v250_v58, %v7172_v39  ;;  %v7191_v61 = vsub.f32 %v253_v25, %v7174_v26  ;;  %v422_v62 = vsub.f32 %v7156_v17, %v421_v43  ;;  %v429_v30 = vsub.f32 %v7161_v27, %v428_v19 }
  0x5d   :  { %6297 = vmatpush3.bf16.msra.mxu1 %v6966_v28  ;;  %5742 = vmatprep.mubr.msk.f32.mxu1 %vm6842_vm1, %v6843_v2  ;;  %v6245_v36 = vpack.c.bf16 %v7072_v53, %v7066_v50  ;;  %v6265_v42 = vpack.c.bf16 %v428_v19, %v421_v43  ;;  %v5257_v53 = vld [vmem:[%s7648_s3] ss:$0 sm:$0xff]  ;;  %s6848_s3 = smov 96  }
  0x5e   :  { %6298 = vmatprep.subr.bf16.mxu1 %v6841_v1  ;;  %5593 = vmatmul.mubr.f32.gmra.mrb[2].mxu0 %v358_v16  ;;  %v386_v37 = vand.u32 4294901760, %v7188_v56  ;;  %v396_v38 = vand.u32 4294901760, %v7191_v61  ;;  %v423_v6 = vand.u32 4294901760, %v422_v62  ;;  %v430_v7 = vand.u32 4294901760, %v429_v30 }
  0x5f   :  { %5595 = vmatprep.mubr.f32.mxu0 %v368_v24 }
  0x60   :  { %v387_v22 = vsub.f32 %v7188_v56, %v386_v37  ;;  %v397_v16 = vsub.f32 %v7191_v61, %v396_v38  ;;  %v6241_v54 = vpack.c.bf16 %v430_v7, %v423_v6 }
  0x61   :  { %6300 = vmatpush3.bf16.msra.mxu1 %v6974_v32 }
  0x62   :  { %6301 = vmatprep.subr.bf16.mxu1 %v6841_v1  ;;  %5596 = vmatmul.mubr.f32.gmra.mrb[4].mxu0 %v378_v31  ;;  %v388_v34 = vand.u32 4294901760, %v387_v22  ;;  %v398_v35 = vand.u32 4294901760, %v397_v16 }
  0x63   :  { %6242 = vmatprep.subr.bf16.mxu0 %v6241_v54 }
  0x64   :  { %5743 = vmatmul.mubr.f32.vlgmr.msra.gmra.mrb[0].mxu1 %v1131_v45  ;;  %6244 = vmatpush3.bf16.msra.mxu0 %v6241_v54 }
  0x65   :  { %6303 = vmatpush3.bf16.msra.mxu1 %v7184_v23  ;;  %5753 = vmatprep.mubr.msk.f32.mxu1 %vm6842_vm1, %v6843_v2 }
  0x66   :  { %6304 = vmatprep.subr.bf16.mxu1 %v6841_v1  ;;  %5598 = vmatprep.mubr.f32.mxu0 %v388_v34 }
  0x67   :  { %5599 = vmatmul.mubr.f32.gmra.mrb[6].mxu0 %v398_v35  ;;  %6246 = vmatprep.subr.bf16.mxu0 %v6245_v36 }
  0x68   :  { %5609 = vmatprep.mubr.f32.mxu0 %v7086_v63 }
  0x69   :  { %6306 = vmatpush3.bf16.msra.mxu1 %v7208_v21 }
  0x6a   :  { %6307 = vmatprep.subr.bf16.mxu1 %v6841_v1 }
  0x6b   :  { %5610 = vmatmul.mubr.f32.vlgmr.msra.gmra.mrb[0].mxu0 %v7088_v0 }
  0x6c   :  { %5754 = vmatmul.mubr.f32.vlgmr.msra.gmra.mrb[0].mxu1 %v6968_v29  ;;  %5612 = vmatprep.mubr.f32.mxu0 %v7090_v3 }
  0x6d   :  { %6309 = vmatpush3.bf16.msra.mxu1 %v6966_v28  ;;  %5764 = vmatprep.mubr.msk.f32.mxu1 %vm6842_vm1, %v6843_v2 }
  0x6e   :  { %6310 = vmatprep.subr.bf16.mxu1 %v6841_v1  ;;  %6248 = vmatpush3.bf16.msra.mxu0 %v6245_v36 }
  0x6f   :  { %6250 = vmatprep.subr.bf16.mxu0 %v6249_v41  ;;  %5613 = vmatmul.mubr.f32.gmra.mrb[2].mxu0 %v7092_v4 }
  0x70   :  { %5615 = vmatprep.mubr.f32.mxu0 %v7123_v51 }
  0x71   :  { %6312 = vmatpush3.bf16.msra.mxu1 %v6974_v32 }
  0x72   :  { %6313 = vmatprep.subr.bf16.mxu1 %v6841_v1  ;;  %6252 = vmatpush3.bf16.msra.mxu0 %v6249_v41 }
  0x73   :  { %6254 = vmatprep.subr.bf16.mxu0 %v6993_v40  ;;  %5616 = vmatmul.mubr.f32.gmra.mrb[4].mxu0 %v7125_v55 }
  0x74   :  { %5765 = vmatmul.mubr.f32.vlgmr.msra.gmra.mrb[0].mxu1 %v6968_v29  ;;  %5618 = vmatprep.mubr.f32.mxu0 %v7172_v39  ;;  %v6261_v29 = vpack.c.bf16 %v414_v60, %v407_v59 }
  0x75   :  { %6315 = vmatpush3.bf16.msra.mxu1 %v6966_v28  ;;  %5775 = vmatprep.mubr.msk.f32.mxu1 %vm6842_vm1, %v6843_v2 }
  0x76   :  { %6316 = vmatprep.subr.bf16.mxu1 %v6841_v1 }
  0x77   :  { %5619 = vmatmul.mubr.f32.gmra.mrb[6].mxu0 %v7174_v26 }
  0x78   :  { %5629 = vmatprep.mubr.f32.mxu0 %v7103_v12 }
  0x79   :  { %6318 = vmatpush3.bf16.msra.mxu1 %v6974_v32 }
  0x7a   :  { %6319 = vmatprep.subr.bf16.mxu1 %v6841_v1 }
  0x7b   :  { %5630 = vmatmul.mubr.f32.vlgmr.msra.gmra.mrb[0].mxu0 %v7106_v13 }
  0x7c   :  { %5632 = vmatprep.mubr.f32.mxu0 %v7109_v14  ;;  %6256 = vmatpush3.bf16.msra.mxu0 %v6993_v40 }
  0x7d   :  { %6258 = vmatprep.subr.bf16.mxu0 %v7020_v52 }
  0x7f   :  { %5633 = vmatmul.mubr.f32.gmra.mrb[2].mxu0 %v7112_v15 }
  0x80   :  { %5635 = vmatprep.mubr.f32.mxu0 %v7143_v20  ;;  %6260 = vmatpush3.bf16.msra.mxu0 %v7020_v52 }
  0x81   :  { %6262 = vmatprep.subr.bf16.mxu0 %v6261_v29 }
  0x83   :  { %5636 = vmatmul.mubr.f32.gmra.mrb[4].mxu0 %v7146_v33 }
  0x84   :  { %5638 = vmatprep.mubr.f32.mxu0 %v7188_v56 }
  0x87   :  { %5639 = vmatmul.mubr.f32.gmra.mrb[6].mxu0 %v7191_v61 }
  0x88   :  { %5649 = vmatprep.mubr.f32.mxu0 %v326_v44 }
  0x8b   :  { %5650 = vmatmul.mubr.f32.vlgmr.msra.gmra.mrb[0].mxu0 %v336_v46 }
  0x8c   :  { %5652 = vmatprep.mubr.f32.mxu0 %v346_v47  ;;  %6264 = vmatpush3.bf16.msra.mxu0 %v6261_v29 }
  0x8d   :  { %6266 = vmatprep.subr.bf16.mxu0 %v6265_v42 }
  0x8f   :  { %5653 = vmatmul.mubr.f32.gmra.mrb[2].mxu0 %v356_v49 }
  0x90   :  { %5655 = vmatprep.mubr.f32.mxu0 %v366_v9  ;;  %6268 = vmatpush3.bf16.msra.mxu0 %v6265_v42 }
  0x91   :  { %6270 = vmatprep.subr.bf16.mxu0 %v6993_v40 }
  0x93   :  { %5656 = vmatmul.mubr.f32.gmra.mrb[4].mxu0 %v376_v10 }
  0x94   :  { %5658 = vmatprep.mubr.f32.mxu0 %v386_v37 }
  0x97   :  { %5659 = vmatmul.mubr.f32.gmra.mrb[6].mxu0 %v396_v38 }
  0x98   :  { %5669 = vmatprep.mubr.f32.mxu0 %v7086_v63 }
  0x9b   :  { %5670 = vmatmul.mubr.f32.vlgmr.msra.gmra.mrb[0].mxu0 %v7088_v0 }
  0x9c   :  { %5672 = vmatprep.mubr.f32.mxu0 %v7090_v3  ;;  %6272 = vmatpush3.bf16.msra.mxu0 %v6993_v40 }
  0x9d   :  { %6274 = vmatprep.subr.bf16.mxu0 %v7020_v52 }
  0x9f   :  { %5673 = vmatmul.mubr.f32.gmra.mrb[2].mxu0 %v7092_v4 }
  0xa0   :  { %5675 = vmatprep.mubr.f32.mxu0 %v7123_v51  ;;  %6276 = vmatpush3.bf16.msra.mxu0 %v7020_v52 }
  0xa1   :  { %6349 = vmatprep.subr.bf16.mxu0 %v6841_v1 }
  0xa3   :  { %5676 = vmatmul.mubr.f32.gmra.mrb[4].mxu0 %v7125_v55 }
  0xa4   :  { %5678 = vmatprep.mubr.f32.mxu0 %v7172_v39 }
  0xa7   :  { %5679 = vmatmul.mubr.f32.gmra.mrb[6].mxu0 %v7174_v26 }
  0xa8   :  { %5689 = vmatprep.mubr.f32.mxu0 %v7086_v63 }
  0xab   :  { %5690 = vmatmul.mubr.f32.vlgmr.msra.gmra.mrb[0].mxu0 %v7088_v0 }
  0xac   :  { %5692 = vmatprep.mubr.f32.mxu0 %v7090_v3  ;;  %6351 = vmatpush3.bf16.msra.mxu0 %v6966_v28 }
  0xad   :  { %6352 = vmatprep.subr.bf16.mxu0 %v6841_v1 }
  0xaf   :  { %5693 = vmatmul.mubr.f32.gmra.mrb[2].mxu0 %v7092_v4 }
  0xb0   :  { %5695 = vmatprep.mubr.f32.mxu0 %v7123_v51  ;;  %6354 = vmatpush3.bf16.msra.mxu0 %v6974_v32 }
  0xb1   :  { %6355 = vmatprep.subr.bf16.mxu0 %v6841_v1 }
  0xb3   :  { %5696 = vmatmul.mubr.f32.gmra.mrb[4].mxu0 %v7125_v55 }
  0xb4   :  { %5698 = vmatprep.mubr.f32.mxu0 %v7172_v39 }
  0xb5   :  { %v7311_v40 = vpop.permute.xlu0 %1557 }
  0xb7   :  { %5699 = vmatmul.mubr.f32.gmra.mrb[6].mxu0 %v7174_v26 }
  0xb8   :  { %5841 = vmatprep.mubr.msk.f32.mxu0 %vm6842_vm1, %v6843_v2 }
 0x147   :  { %v1541_v45 = vpop.f32.mrb[0].mxu1 }
 0x148   :  { %v1560_v52 = vadd.f32 %v7311_v40, %v1541_v45  ;;  %v5766_v50 = vpop.f32.mrb[1].mxu1 }
 0x14a   :  { %1562 = vrot.lane.b32.xlu0 %v1560_v52, %s6846_s15 }
 0x14e   :  { %1578 = vrot.lane.b32.xlu0 %v6949_v18, %s6847_s4 }
 0x17e   :  { %v5691_v59 = vpop.f32.mrb[0].mxu0 }
 0x17f   :  { %v6565_v60 = vadd.f32 %v5691_v59, %v5257_v53  ;;  %v995_v63 = vpop.f32.mrb[1].mxu0 }
 0x180   :  { %v6566_v0 = vadd.f32 %v5257_v53, %v995_v63 }
 0x181   :  { %1043 = vst.msk [vmem:[#allocation3 + $0x8] sm:$0xff] %vm1041_vm2, %v6565_v60 }
 0x182   :  { %1042 = vst.msk [vmem:[#allocation3] sm:$0xff] %vm1041_vm2, %v6566_v0  ;;  %v5694_v3 = vpop.f32.mrb[2].mxu0 }
 0x183   :  { %v6567_v4 = vadd.f32 %v5694_v3, %v5257_v53  ;;  %v1007_v12 = vpop.f32.mrb[3].mxu0 }
 0x184   :  { %v6568_v13 = vadd.f32 %v5257_v53, %v1007_v12 }
 0x185   :  { %1045 = vst.msk [vmem:[#allocation3 + $0x18] sm:$0xff] %vm1041_vm2, %v6567_v4 }
 0x186   :  { %1044 = vst.msk [vmem:[#allocation3 + $0x10] sm:$0xff] %vm1041_vm2, %v6568_v13  ;;  %v5697_v18 = vpop.f32.mrb[4].mxu0 }
 0x187   :  { %v6569_v14 = vadd.f32 %v5697_v18, %v5257_v53  ;;  %v1019_v15 = vpop.f32.mrb[5].mxu0 }
 0x188   :  { %v6570_v44 = vadd.f32 %v5257_v53, %v1019_v15  ;;  %v1584_v34 = vld [vmem:[#allocation3 + $0x8] sm:$0xff] }
 0x189   :  { %1047 = vst.msk [vmem:[#allocation3 + $0x28] sm:$0xff] %vm1041_vm2, %v6569_v14  ;;  %v1056_v55 = vld [vmem:[#allocation3] sm:$0xff] }
 0x18a   :  { %1046 = vst.msk [vmem:[#allocation3 + $0x20] sm:$0xff] %vm1041_vm2, %v6570_v44  ;;  %v5700_v46 = vpop.f32.mrb[6].mxu0  ;;  %v1545_v20 = vadd.f32 %v1541_v45, %v1056_v55 }
 0x18b   :  { %v6571_v47 = vadd.f32 %v5700_v46, %v5257_v53  ;;  %v1031_v49 = vpop.f32.mrb[7].mxu0 }
 0x18c   :  { %v6572_v51 = vadd.f32 %v5257_v53, %v1031_v49  ;;  %v5258_v33 = vmul.f32 -1.442695, %v1545_v20 }
 0x18d   :  { %1049 = vst.msk [vmem:[#allocation3 + $0x38] sm:$0xff] %vm1041_vm2, %v6571_v47 }
 0x18e   :  { %1048 = vst.msk [vmem:[#allocation3 + $0x30] sm:$0xff] %vm1041_vm2, %v6572_v51  ;;  %6718 = vpow2.f32 %v5258_v33 }
 0x198   :  { %v6719_v9 = vpop.eup %6718 }
 0x199   :  { %v1549_v10 = vadd.f32 1.0, %v6719_v9 }
 0x19b   :  { %6720 = vrcp.f32 %v1549_v10 }
 0x1a5   :  { %v6721_v17 = vpop.eup %6720 }
 0x1a6   :  { %v1572_v43 = vsub.f32 1.0, %v6721_v17 }
 0x1bc   :  { %v1563_v27 = vpop.permute.xlu0 %1562 }
 0x1bd   :  { %v1565_v57 = vmul.f32 %v6721_v17, %v1563_v27 }
 0x1bf   :  { %1567 = vrot.lane.b32.xlu1 %v1565_v57, %s6846_s15 }
 0x1c0   :  { %v1579_v26 = vpop.permute.xlu0 %1578 }
 0x1c1   :  { %v1581_v24 = vmul.f32 %v6721_v17, %v1579_v26 }
 0x231   :  { %v1568_v58 = vpop.permute.xlu1 %1567 }
 0x232   :  { %v1570_v25 = vadd.f32 %v1568_v58, %v1056_v55  ;;  %v2103_v55 = vld [vmem:[#allocation3 + $0x10] sm:$0xff] }
 0x234   :  { %6722 = vtanh.f32 %v1570_v25 }
 0x23e   :  { %v6723_v39 = vpop.eup %6722 }
 0x23f   :  { %1574 = vrot.lane.b32.xlu1 %v6723_v39, %s6848_s3 }
 0x2b1   :  { %v1575_v19 = vpop.permute.xlu1 %1574 }
 0x2b2   :  { %v1577_v56 = vmul.f32 %v1575_v19, %v1572_v43 }
 0x2b4   :  { %v7330_v61 = vadd.f32 %v1581_v24, %v1577_v56 }
 0x2b6   :  { %1586 = vrot.lane.b32.xlu1 %v7330_v61, %s6848_s3 }
 0x328   :  { %v1587_v62 = vpop.permute.xlu1 %1586 }
 0x329   :  { %v1588_v30 = vsel %vm73_vm0, %v1587_v62, 0 }
 0x32a   :  { %v1659_v31 = vand.u32 4294901760, %v1588_v30 }
 0x32c   :  { %v1660_v37 = vsub.f32 %v1588_v30, %v1659_v31 }
 0x32e   :  { %v1661_v38 = vand.u32 4294901760, %v1660_v37 }
 0x330   :  { %v1662_v6 = vsub.f32 %v1660_v37, %v1661_v38 }
 0x332   :  { %v1663_v7 = vand.u32 4294901760, %v1662_v6 }
 0x334   :  { %5776 = vmatmul.mubr.f32.vlgmr.msra.gmra.mrb[2].mxu1 %v1663_v7 }
 0x335   :  { %6321 = vmatpush3.bf16.msra.mxu1 %v7039_v8  ;;  %5786 = vmatprep.mubr.msk.f32.mxu1 %vm6842_vm1, %v6843_v2 }
 0x336   :  { %6322 = vmatprep.subr.bf16.mxu1 %v6841_v1 }
 0x339   :  { %6324 = vmatpush3.bf16.msra.mxu1 %v7043_v11 }
 0x33a   :  { %6325 = vmatprep.subr.bf16.mxu1 %v6841_v1 }
 0x33c   :  { %5787 = vmatmul.mubr.f32.vlgmr.msra.gmra.mrb[2].mxu1 %v1659_v31 }
 0x33d   :  { %6327 = vmatpush3.bf16.msra.mxu1 %v7007_v48  ;;  %5797 = vmatprep.mubr.msk.f32.mxu1 %vm6842_vm1, %v6843_v2 }
 0x33e   :  { %6328 = vmatprep.subr.bf16.mxu1 %v6841_v1 }
 0x341   :  { %6330 = vmatpush3.bf16.msra.mxu1 %v7034_v5 }
 0x342   :  { %6331 = vmatprep.subr.bf16.mxu1 %v6841_v1 }
 0x344   :  { %5798 = vmatmul.mubr.f32.vlgmr.msra.gmra.mrb[2].mxu1 %v1660_v37 }
 0x345   :  { %6333 = vmatpush3.bf16.msra.mxu1 %v6966_v28  ;;  %5808 = vmatprep.mubr.msk.f32.mxu1 %vm6842_vm1, %v6843_v2 }
 0x346   :  { %6334 = vmatprep.subr.bf16.mxu1 %v6841_v1 }
 0x349   :  { %6336 = vmatpush3.bf16.msra.mxu1 %v6974_v32 }
 0x34a   :  { %6337 = vmatprep.subr.bf16.mxu1 %v6841_v1 }
 0x34c   :  { %5809 = vmatmul.mubr.f32.vlgmr.msra.gmra.mrb[2].mxu1 %v1661_v38 }
 0x34d   :  { %6339 = vmatpush3.bf16.msra.mxu1 %v7184_v23  ;;  %5819 = vmatprep.mubr.msk.f32.mxu1 %vm6842_vm1, %v6843_v2 }
 0x34e   :  { %6340 = vmatprep.subr.bf16.mxu1 %v6841_v1 }
 0x351   :  { %6342 = vmatpush3.bf16.msra.mxu1 %v7208_v21 }
 0x352   :  { %6343 = vmatprep.subr.bf16.mxu1 %v6841_v1 }
 0x354   :  { %5820 = vmatmul.mubr.f32.vlgmr.msra.gmra.mrb[2].mxu1 %v1659_v31 }
 0x355   :  { %6345 = vmatpush3.bf16.msra.mxu1 %v6966_v28  ;;  %5830 = vmatprep.mubr.msk.f32.mxu1 %vm6842_vm1, %v6843_v2 }
 0x356   :  { %6346 = vmatprep.subr.bf16.mxu1 %v6841_v1 }
 0x359   :  { %6348 = vmatpush3.bf16.msra.mxu1 %v6974_v32 }
 0x35a   :  { %6385 = vmatprep.subr.bf16.mxu1 %v6841_v1 }
 0x35c   :  { %5831 = vmatmul.mubr.f32.vlgmr.msra.gmra.mrb[2].mxu1 %v1659_v31 }
 0x35d   :  { %6387 = vmatpush3.bf16.msra.mxu1 %v6966_v28  ;;  %5907 = vmatprep.mubr.msk.f32.mxu1 %vm6842_vm1, %v6843_v2 }
 0x35e   :  { %6388 = vmatprep.subr.bf16.mxu1 %v6841_v1 }
 0x361   :  { %6390 = vmatpush3.bf16.msra.mxu1 %v6974_v32 }
 0x362   :  { %6391 = vmatprep.subr.bf16.mxu1 %v6841_v1 }
 0x42f   :  { %v2071_v22 = vpop.f32.mrb[2].mxu1 }
 0x430   :  { %v2082_v16 = vadd.f32 %v2071_v22, %v7311_v40  ;;  %v5832_v54 = vpop.f32.mrb[3].mxu1  ;;  %v2075_v35 = vadd.f32 %v2071_v22, %v1584_v34 }
 0x431   :  { %v2622_v54 = vld [vmem:[#allocation3 + $0x18] sm:$0xff] }
 0x432   :  { %2084 = vrot.lane.b32.xlu0 %v2082_v16, %s6846_s15  ;;  %v5260_v36 = vmul.f32 -1.442695, %v2075_v35 }
 0x434   :  { %6724 = vpow2.f32 %v5260_v36 }
 0x43e   :  { %v6725_v41 = vpop.eup %6724 }
 0x43f   :  { %v2079_v29 = vadd.f32 1.0, %v6725_v41 }
 0x441   :  { %6726 = vrcp.f32 %v2079_v29 }
 0x44b   :  { %v6727_v42 = vpop.eup %6726 }
 0x44c   :  { %v2094_v60 = vsub.f32 1.0, %v6727_v42  ;;  %v2100_v0 = vmul.f32 %v6727_v42, %v7330_v61 }
 0x4a4   :  { %v2085_v45 = vpop.permute.xlu0 %2084 }
 0x4a5   :  { %v2087_v52 = vmul.f32 %v6727_v42, %v2085_v45 }
 0x4a7   :  { %2089 = vrot.lane.b32.xlu1 %v2087_v52, %s6846_s15 }
 0x519   :  { %v2090_v50 = vpop.permute.xlu1 %2089 }
 0x51a   :  { %v2092_v53 = vadd.f32 %v2090_v50, %v1584_v34 }
 0x51c   :  { %6728 = vtanh.f32 %v2092_v53 }
 0x526   :  { %v6729_v59 = vpop.eup %6728 }
 0x527   :  { %2096 = vrot.lane.b32.xlu0 %v6729_v59, %s6848_s3 }
 0x599   :  { %v2097_v63 = vpop.permute.xlu0 %2096 }
 0x59a   :  { %v2099_v3 = vmul.f32 %v2097_v63, %v2094_v60 }
 0x59c   :  { %v7376_v4 = vadd.f32 %v2100_v0, %v2099_v3 }
 0x59e   :  { %2105 = vrot.lane.b32.xlu1 %v7376_v4, %s6848_s3 }
 0x610   :  { %v2106_v12 = vpop.permute.xlu1 %2105 }
 0x611   :  { %v2107_v13 = vsel %vm73_vm0, %v2106_v12, 0 }
 0x612   :  { %v2178_v18 = vand.u32 4294901760, %v2107_v13 }
 0x614   :  { %v2179_v14 = vsub.f32 %v2107_v13, %v2178_v18 }
 0x616   :  { %v2180_v15 = vand.u32 4294901760, %v2179_v14 }
 0x618   :  { %v2181_v44 = vsub.f32 %v2179_v14, %v2180_v15 }
 0x61a   :  { %v2182_v46 = vand.u32 4294901760, %v2181_v44 }
 0x61c   :  { %5842 = vmatmul.mubr.f32.vlgmr.msra.gmra.mrb[8].mxu0 %v2182_v46 }
 0x61d   :  { %6357 = vmatpush3.bf16.msra.mxu0 %v7039_v8  ;;  %5852 = vmatprep.mubr.msk.f32.mxu0 %vm6842_vm1, %v6843_v2 }
 0x61e   :  { %6358 = vmatprep.subr.bf16.mxu0 %v6841_v1 }
 0x621   :  { %6360 = vmatpush3.bf16.msra.mxu0 %v7043_v11 }
 0x622   :  { %6361 = vmatprep.subr.bf16.mxu0 %v6841_v1 }
 0x624   :  { %5853 = vmatmul.mubr.f32.vlgmr.msra.gmra.mrb[8].mxu0 %v2178_v18 }
 0x625   :  { %6363 = vmatpush3.bf16.msra.mxu0 %v7007_v48  ;;  %5863 = vmatprep.mubr.msk.f32.mxu0 %vm6842_vm1, %v6843_v2 }
 0x626   :  { %6364 = vmatprep.subr.bf16.mxu0 %v6841_v1 }
 0x629   :  { %6366 = vmatpush3.bf16.msra.mxu0 %v7034_v5 }
 0x62a   :  { %6367 = vmatprep.subr.bf16.mxu0 %v6841_v1 }
 0x62c   :  { %5864 = vmatmul.mubr.f32.vlgmr.msra.gmra.mrb[8].mxu0 %v2179_v14 }
 0x62d   :  { %6369 = vmatpush3.bf16.msra.mxu0 %v6966_v28  ;;  %5874 = vmatprep.mubr.msk.f32.mxu0 %vm6842_vm1, %v6843_v2 }
 0x62e   :  { %6370 = vmatprep.subr.bf16.mxu0 %v6841_v1 }
 0x631   :  { %6372 = vmatpush3.bf16.msra.mxu0 %v6974_v32 }
 0x632   :  { %6373 = vmatprep.subr.bf16.mxu0 %v6841_v1 }
 0x634   :  { %5875 = vmatmul.mubr.f32.vlgmr.msra.gmra.mrb[8].mxu0 %v2180_v15 }
 0x635   :  { %6375 = vmatpush3.bf16.msra.mxu0 %v7184_v23  ;;  %5885 = vmatprep.mubr.msk.f32.mxu0 %vm6842_vm1, %v6843_v2 }
 0x636   :  { %6376 = vmatprep.subr.bf16.mxu0 %v6841_v1 }
 0x639   :  { %6378 = vmatpush3.bf16.msra.mxu0 %v7208_v21 }
 0x63a   :  { %6379 = vmatprep.subr.bf16.mxu0 %v6841_v1 }
 0x63c   :  { %5886 = vmatmul.mubr.f32.vlgmr.msra.gmra.mrb[8].mxu0 %v2178_v18 }
 0x63d   :  { %6381 = vmatpush3.bf16.msra.mxu0 %v6966_v28  ;;  %5896 = vmatprep.mubr.msk.f32.mxu0 %vm6842_vm1, %v6843_v2 }
 0x63e   :  { %6382 = vmatprep.subr.bf16.mxu0 %v6841_v1 }
 0x641   :  { %6384 = vmatpush3.bf16.msra.mxu0 %v6974_v32 }
 0x642   :  { %6421 = vmatprep.subr.bf16.mxu0 %v6841_v1 }
 0x644   :  { %5897 = vmatmul.mubr.f32.vlgmr.msra.gmra.mrb[8].mxu0 %v2178_v18 }
 0x645   :  { %6423 = vmatpush3.bf16.msra.mxu0 %v6966_v28  ;;  %5973 = vmatprep.mubr.msk.f32.mxu0 %vm6842_vm1, %v6843_v2 }
 0x646   :  { %6424 = vmatprep.subr.bf16.mxu0 %v6841_v1 }
 0x649   :  { %6426 = vmatpush3.bf16.msra.mxu0 %v6974_v32 }
 0x64a   :  { %6427 = vmatprep.subr.bf16.mxu0 %v6841_v1 }
 0x717   :  { %v2590_v47 = vpop.f32.mrb[8].mxu0 }
 0x718   :  { %v2601_v49 = vadd.f32 %v2590_v47, %v7311_v40  ;;  %v5898_v51 = vpop.f32.mrb[9].mxu0  ;;  %v2594_v20 = vadd.f32 %v2590_v47, %v2103_v55 }
 0x719   :  { %v3141_v51 = vld [vmem:[#allocation3 + $0x20] sm:$0xff] }
 0x71a   :  { %2603 = vrot.lane.b32.xlu0 %v2601_v49, %s6846_s15  ;;  %v5261_v33 = vmul.f32 -1.442695, %v2594_v20 }
 0x71c   :  { %6730 = vpow2.f32 %v5261_v33 }
 0x726   :  { %v6731_v9 = vpop.eup %6730 }
 0x727   :  { %v2598_v10 = vadd.f32 1.0, %v6731_v9 }
 0x729   :  { %6732 = vrcp.f32 %v2598_v10 }
 0x733   :  { %v6733_v17 = vpop.eup %6732 }
 0x734   :  { %v2613_v26 = vsub.f32 1.0, %v6733_v17  ;;  %v2619_v19 = vmul.f32 %v6733_v17, %v7376_v4 }
 0x78c   :  { %v2604_v27 = vpop.permute.xlu0 %2603 }
 0x78d   :  { %v2606_v57 = vmul.f32 %v6733_v17, %v2604_v27 }
 0x78f   :  { %2608 = vrot.lane.b32.xlu1 %v2606_v57, %s6846_s15 }
 0x801   :  { %v2609_v58 = vpop.permute.xlu1 %2608 }
 0x802   :  { %v2611_v25 = vadd.f32 %v2609_v58, %v2103_v55 }
 0x804   :  { %6734 = vtanh.f32 %v2611_v25 }
 0x80e   :  { %v6735_v39 = vpop.eup %6734 }
 0x80f   :  { %2615 = vrot.lane.b32.xlu0 %v6735_v39, %s6848_s3 }
 0x881   :  { %v2616_v43 = vpop.permute.xlu0 %2615 }
 0x882   :  { %v2618_v24 = vmul.f32 %v2616_v43, %v2613_v26 }
 0x884   :  { %v7422_v56 = vadd.f32 %v2619_v19, %v2618_v24 }
 0x886   :  { %2624 = vrot.lane.b32.xlu1 %v7422_v56, %s6848_s3 }
 0x8f8   :  { %v2625_v61 = vpop.permute.xlu1 %2624 }
 0x8f9   :  { %v2626_v62 = vsel %vm73_vm0, %v2625_v61, 0 }
 0x8fa   :  { %v2697_v30 = vand.u32 4294901760, %v2626_v62 }
 0x8fc   :  { %v2698_v31 = vsub.f32 %v2626_v62, %v2697_v30 }
 0x8fe   :  { %v2699_v37 = vand.u32 4294901760, %v2698_v31 }
 0x900   :  { %v2700_v38 = vsub.f32 %v2698_v31, %v2699_v37 }
 0x902   :  { %v2701_v6 = vand.u32 4294901760, %v2700_v38 }
 0x904   :  { %5908 = vmatmul.mubr.f32.vlgmr.msra.gmra.mrb[4].mxu1 %v2701_v6 }
 0x905   :  { %6393 = vmatpush3.bf16.msra.mxu1 %v7039_v8  ;;  %5918 = vmatprep.mubr.msk.f32.mxu1 %vm6842_vm1, %v6843_v2 }
 0x906   :  { %6394 = vmatprep.subr.bf16.mxu1 %v6841_v1 }
 0x909   :  { %6396 = vmatpush3.bf16.msra.mxu1 %v7043_v11 }
 0x90a   :  { %6397 = vmatprep.subr.bf16.mxu1 %v6841_v1 }
 0x90c   :  { %5919 = vmatmul.mubr.f32.vlgmr.msra.gmra.mrb[4].mxu1 %v2697_v30 }
 0x90d   :  { %6399 = vmatpush3.bf16.msra.mxu1 %v7007_v48  ;;  %5929 = vmatprep.mubr.msk.f32.mxu1 %vm6842_vm1, %v6843_v2 }
 0x90e   :  { %6400 = vmatprep.subr.bf16.mxu1 %v6841_v1 }
 0x911   :  { %6402 = vmatpush3.bf16.msra.mxu1 %v7034_v5 }
 0x912   :  { %6403 = vmatprep.subr.bf16.mxu1 %v6841_v1 }
 0x914   :  { %5930 = vmatmul.mubr.f32.vlgmr.msra.gmra.mrb[4].mxu1 %v2698_v31 }
 0x915   :  { %6405 = vmatpush3.bf16.msra.mxu1 %v6966_v28  ;;  %5940 = vmatprep.mubr.msk.f32.mxu1 %vm6842_vm1, %v6843_v2 }
 0x916   :  { %6406 = vmatprep.subr.bf16.mxu1 %v6841_v1 }
 0x919   :  { %6408 = vmatpush3.bf16.msra.mxu1 %v6974_v32 }
 0x91a   :  { %6409 = vmatprep.subr.bf16.mxu1 %v6841_v1 }
 0x91c   :  { %5941 = vmatmul.mubr.f32.vlgmr.msra.gmra.mrb[4].mxu1 %v2699_v37 }
 0x91d   :  { %6411 = vmatpush3.bf16.msra.mxu1 %v7184_v23  ;;  %5951 = vmatprep.mubr.msk.f32.mxu1 %vm6842_vm1, %v6843_v2 }
 0x91e   :  { %6412 = vmatprep.subr.bf16.mxu1 %v6841_v1 }
 0x921   :  { %6414 = vmatpush3.bf16.msra.mxu1 %v7208_v21 }
 0x922   :  { %6415 = vmatprep.subr.bf16.mxu1 %v6841_v1 }
 0x924   :  { %5952 = vmatmul.mubr.f32.vlgmr.msra.gmra.mrb[4].mxu1 %v2697_v30 }
 0x925   :  { %6417 = vmatpush3.bf16.msra.mxu1 %v6966_v28  ;;  %5962 = vmatprep.mubr.msk.f32.mxu1 %vm6842_vm1, %v6843_v2 }
 0x926   :  { %6418 = vmatprep.subr.bf16.mxu1 %v6841_v1 }
 0x929   :  { %6420 = vmatpush3.bf16.msra.mxu1 %v6974_v32 }
 0x92a   :  { %6457 = vmatprep.subr.bf16.mxu1 %v6841_v1 }
 0x92c   :  { %5963 = vmatmul.mubr.f32.vlgmr.msra.gmra.mrb[4].mxu1 %v2697_v30 }
 0x92d   :  { %6459 = vmatpush3.bf16.msra.mxu1 %v6966_v28  ;;  %6039 = vmatprep.mubr.msk.f32.mxu1 %vm6842_vm1, %v6843_v2 }
 0x92e   :  { %6460 = vmatprep.subr.bf16.mxu1 %v6841_v1 }
 0x931   :  { %6462 = vmatpush3.bf16.msra.mxu1 %v6974_v32 }
 0x932   :  { %6463 = vmatprep.subr.bf16.mxu1 %v6841_v1 }
 0x9ff   :  { %v3109_v7 = vpop.f32.mrb[4].mxu1 }
 0xa00   :  { %v3120_v22 = vadd.f32 %v3109_v7, %v7311_v40  ;;  %v5964_v16 = vpop.f32.mrb[5].mxu1  ;;  %v3113_v34 = vadd.f32 %v3109_v7, %v2622_v54 }
 0xa01   :  { %v3660_v16 = vld [vmem:[#allocation3 + $0x28] sm:$0xff] }
 0xa02   :  { %3122 = vrot.lane.b32.xlu0 %v3120_v22, %s6846_s15  ;;  %v5262_v35 = vmul.f32 -1.442695, %v3113_v34 }
 0xa04   :  { %6736 = vpow2.f32 %v5262_v35 }
 0xa0e   :  { %v6737_v36 = vpop.eup %6736 }
 0xa0f   :  { %v3117_v41 = vadd.f32 1.0, %v6737_v36 }
 0xa11   :  { %6738 = vrcp.f32 %v3117_v41 }
 0xa1b   :  { %v6739_v29 = vpop.eup %6738 }
 0xa1c   :  { %v3132_v59 = vsub.f32 1.0, %v6739_v29  ;;  %v3138_v63 = vmul.f32 %v6739_v29, %v7422_v56 }
 0xa74   :  { %v3123_v42 = vpop.permute.xlu0 %3122 }
 0xa75   :  { %v3125_v45 = vmul.f32 %v6739_v29, %v3123_v42 }
 0xa77   :  { %3127 = vrot.lane.b32.xlu1 %v3125_v45, %s6846_s15 }
 0xae9   :  { %v3128_v52 = vpop.permute.xlu1 %3127 }
 0xaea   :  { %v3130_v50 = vadd.f32 %v3128_v52, %v2622_v54 }
 0xaec   :  { %6740 = vtanh.f32 %v3130_v50 }
 0xaf6   :  { %v6741_v53 = vpop.eup %6740 }
 0xaf7   :  { %3134 = vrot.lane.b32.xlu0 %v6741_v53, %s6848_s3 }
 0xb69   :  { %v3135_v60 = vpop.permute.xlu0 %3134 }
 0xb6a   :  { %v3137_v0 = vmul.f32 %v3135_v60, %v3132_v59 }
 0xb6c   :  { %v7468_v3 = vadd.f32 %v3138_v63, %v3137_v0 }
 0xb6e   :  { %3143 = vrot.lane.b32.xlu1 %v7468_v3, %s6848_s3 }
 0xbe0   :  { %v3144_v4 = vpop.permute.xlu1 %3143 }
 0xbe1   :  { %v3145_v12 = vsel %vm73_vm0, %v3144_v4, 0 }
 0xbe2   :  { %v3216_v13 = vand.u32 4294901760, %v3145_v12 }
 0xbe4   :  { %v3217_v18 = vsub.f32 %v3145_v12, %v3216_v13 }
 0xbe6   :  { %v3218_v14 = vand.u32 4294901760, %v3217_v18 }
 0xbe8   :  { %v3219_v15 = vsub.f32 %v3217_v18, %v3218_v14 }
 0xbea   :  { %v3220_v44 = vand.u32 4294901760, %v3219_v15 }
 0xbec   :  { %5974 = vmatmul.mubr.f32.vlgmr.msra.gmra.mrb[10].mxu0 %v3220_v44 }
 0xbed   :  { %6429 = vmatpush3.bf16.msra.mxu0 %v7039_v8  ;;  %5984 = vmatprep.mubr.msk.f32.mxu0 %vm6842_vm1, %v6843_v2 }
 0xbee   :  { %6430 = vmatprep.subr.bf16.mxu0 %v6841_v1 }
 0xbf1   :  { %6432 = vmatpush3.bf16.msra.mxu0 %v7043_v11 }
 0xbf2   :  { %6433 = vmatprep.subr.bf16.mxu0 %v6841_v1 }
 0xbf4   :  { %5985 = vmatmul.mubr.f32.vlgmr.msra.gmra.mrb[10].mxu0 %v3216_v13 }
 0xbf5   :  { %6435 = vmatpush3.bf16.msra.mxu0 %v7007_v48  ;;  %5995 = vmatprep.mubr.msk.f32.mxu0 %vm6842_vm1, %v6843_v2 }
 0xbf6   :  { %6436 = vmatprep.subr.bf16.mxu0 %v6841_v1 }
 0xbf9   :  { %6438 = vmatpush3.bf16.msra.mxu0 %v7034_v5 }
 0xbfa   :  { %6439 = vmatprep.subr.bf16.mxu0 %v6841_v1 }
 0xbfc   :  { %5996 = vmatmul.mubr.f32.vlgmr.msra.gmra.mrb[10].mxu0 %v3217_v18 }
 0xbfd   :  { %6441 = vmatpush3.bf16.msra.mxu0 %v6966_v28  ;;  %6006 = vmatprep.mubr.msk.f32.mxu0 %vm6842_vm1, %v6843_v2 }
 0xbfe   :  { %6442 = vmatprep.subr.bf16.mxu0 %v6841_v1 }
 0xc01   :  { %6444 = vmatpush3.bf16.msra.mxu0 %v6974_v32 }
 0xc02   :  { %6445 = vmatprep.subr.bf16.mxu0 %v6841_v1 }
 0xc04   :  { %6007 = vmatmul.mubr.f32.vlgmr.msra.gmra.mrb[10].mxu0 %v3218_v14 }
 0xc05   :  { %6447 = vmatpush3.bf16.msra.mxu0 %v7184_v23  ;;  %6017 = vmatprep.mubr.msk.f32.mxu0 %vm6842_vm1, %v6843_v2 }
 0xc06   :  { %6448 = vmatprep.subr.bf16.mxu0 %v6841_v1 }
 0xc09   :  { %6450 = vmatpush3.bf16.msra.mxu0 %v7208_v21 }
 0xc0a   :  { %6451 = vmatprep.subr.bf16.mxu0 %v6841_v1 }
 0xc0c   :  { %6018 = vmatmul.mubr.f32.vlgmr.msra.gmra.mrb[10].mxu0 %v3216_v13 }
 0xc0d   :  { %6453 = vmatpush3.bf16.msra.mxu0 %v6966_v28  ;;  %6028 = vmatprep.mubr.msk.f32.mxu0 %vm6842_vm1, %v6843_v2 }
 0xc0e   :  { %6454 = vmatprep.subr.bf16.mxu0 %v6841_v1 }
 0xc11   :  { %6456 = vmatpush3.bf16.msra.mxu0 %v6974_v32 }
 0xc12   :  { %6493 = vmatprep.subr.bf16.mxu0 %v6841_v1 }
 0xc14   :  { %6029 = vmatmul.mubr.f32.vlgmr.msra.gmra.mrb[10].mxu0 %v3216_v13 }
 0xc15   :  { %6495 = vmatpush3.bf16.msra.mxu0 %v6966_v28  ;;  %6105 = vmatprep.mubr.msk.f32.mxu0 %vm6842_vm1, %v6843_v2 }
 0xc16   :  { %6496 = vmatprep.subr.bf16.mxu0 %v6841_v1 }
 0xc19   :  { %6498 = vmatpush3.bf16.msra.mxu0 %v6974_v32 }
 0xc1a   :  { %6499 = vmatprep.subr.bf16.mxu0 %v6841_v1 }
 0xce7   :  { %v3628_v46 = vpop.f32.mrb[10].mxu0 }
 0xce8   :  { %v3639_v47 = vadd.f32 %v3628_v46, %v7311_v40  ;;  %v6030_v49 = vpop.f32.mrb[11].mxu0  ;;  %v3632_v55 = vadd.f32 %v3628_v46, %v3141_v51 }
 0xce9   :  { %v4179_v49 = vld [vmem:[#allocation3 + $0x30] sm:$0xff] }
 0xcea   :  { %3641 = vrot.lane.b32.xlu0 %v3639_v47, %s6846_s15  ;;  %v5263_v20 = vmul.f32 -1.442695, %v3632_v55 }
 0xcec   :  { %6742 = vpow2.f32 %v5263_v20 }
 0xcf6   :  { %v6743_v33 = vpop.eup %6742 }
 0xcf7   :  { %v3636_v9 = vadd.f32 1.0, %v6743_v33 }
 0xcf9   :  { %6744 = vrcp.f32 %v3636_v9 }
 0xd03   :  { %v6745_v10 = vpop.eup %6744 }
 0xd04   :  { %v3651_v39 = vsub.f32 1.0, %v6745_v10  ;;  %v3657_v43 = vmul.f32 %v6745_v10, %v7468_v3 }
 0xd5c   :  { %v3642_v17 = vpop.permute.xlu0 %3641 }
 0xd5d   :  { %v3644_v27 = vmul.f32 %v6745_v10, %v3642_v17 }
 0xd5f   :  { %3646 = vrot.lane.b32.xlu1 %v3644_v27, %s6846_s15 }
 0xdd1   :  { %v3647_v57 = vpop.permute.xlu1 %3646 }
 0xdd2   :  { %v3649_v58 = vadd.f32 %v3647_v57, %v3141_v51 }
 0xdd4   :  { %6746 = vtanh.f32 %v3649_v58 }
 0xdde   :  { %v6747_v25 = vpop.eup %6746 }
 0xddf   :  { %3653 = vrot.lane.b32.xlu0 %v6747_v25, %s6848_s3 }
 0xe51   :  { %v3654_v26 = vpop.permute.xlu0 %3653 }
 0xe52   :  { %v3656_v19 = vmul.f32 %v3654_v26, %v3651_v39 }
 0xe54   :  { %v7514_v24 = vadd.f32 %v3657_v43, %v3656_v19 }
 0xe56   :  { %3662 = vrot.lane.b32.xlu1 %v7514_v24, %s6848_s3 }
 0xec8   :  { %v3663_v56 = vpop.permute.xlu1 %3662 }
 0xec9   :  { %v3664_v61 = vsel %vm73_vm0, %v3663_v56, 0 }
 0xeca   :  { %v3735_v62 = vand.u32 4294901760, %v3664_v61 }
 0xecc   :  { %v3736_v30 = vsub.f32 %v3664_v61, %v3735_v62 }
 0xece   :  { %v3737_v31 = vand.u32 4294901760, %v3736_v30 }
 0xed0   :  { %v3738_v37 = vsub.f32 %v3736_v30, %v3737_v31 }
 0xed2   :  { %v3739_v38 = vand.u32 4294901760, %v3738_v37 }
 0xed4   :  { %6040 = vmatmul.mubr.f32.vlgmr.msra.gmra.mrb[6].mxu1 %v3739_v38 }
 0xed5   :  { %6465 = vmatpush3.bf16.msra.mxu1 %v7039_v8  ;;  %6050 = vmatprep.mubr.msk.f32.mxu1 %vm6842_vm1, %v6843_v2 }
 0xed6   :  { %6466 = vmatprep.subr.bf16.mxu1 %v6841_v1 }
 0xed9   :  { %6468 = vmatpush3.bf16.msra.mxu1 %v7043_v11 }
 0xeda   :  { %6469 = vmatprep.subr.bf16.mxu1 %v6841_v1 }
 0xedc   :  { %6051 = vmatmul.mubr.f32.vlgmr.msra.gmra.mrb[6].mxu1 %v3735_v62 }
 0xedd   :  { %6471 = vmatpush3.bf16.msra.mxu1 %v7007_v48  ;;  %6061 = vmatprep.mubr.msk.f32.mxu1 %vm6842_vm1, %v6843_v2 }
 0xede   :  { %6472 = vmatprep.subr.bf16.mxu1 %v6841_v1 }
 0xee1   :  { %6474 = vmatpush3.bf16.msra.mxu1 %v7034_v5 }
 0xee2   :  { %6475 = vmatprep.subr.bf16.mxu1 %v6841_v1 }
 0xee4   :  { %6062 = vmatmul.mubr.f32.vlgmr.msra.gmra.mrb[6].mxu1 %v3736_v30 }
 0xee5   :  { %6477 = vmatpush3.bf16.msra.mxu1 %v6966_v28  ;;  %6072 = vmatprep.mubr.msk.f32.mxu1 %vm6842_vm1, %v6843_v2 }
 0xee6   :  { %6478 = vmatprep.subr.bf16.mxu1 %v6841_v1 }
 0xee9   :  { %6480 = vmatpush3.bf16.msra.mxu1 %v6974_v32 }
 0xeea   :  { %6481 = vmatprep.subr.bf16.mxu1 %v6841_v1 }
 0xeec   :  { %6073 = vmatmul.mubr.f32.vlgmr.msra.gmra.mrb[6].mxu1 %v3737_v31 }
 0xeed   :  { %6483 = vmatpush3.bf16.msra.mxu1 %v7184_v23  ;;  %6083 = vmatprep.mubr.msk.f32.mxu1 %vm6842_vm1, %v6843_v2 }
 0xeee   :  { %6484 = vmatprep.subr.bf16.mxu1 %v6841_v1 }
 0xef1   :  { %6486 = vmatpush3.bf16.msra.mxu1 %v7208_v21 }
 0xef2   :  { %6487 = vmatprep.subr.bf16.mxu1 %v6841_v1 }
 0xef4   :  { %6084 = vmatmul.mubr.f32.vlgmr.msra.gmra.mrb[6].mxu1 %v3735_v62 }
 0xef5   :  { %6489 = vmatpush3.bf16.msra.mxu1 %v6966_v28  ;;  %6094 = vmatprep.mubr.msk.f32.mxu1 %vm6842_vm1, %v6843_v2 }
 0xef6   :  { %6490 = vmatprep.subr.bf16.mxu1 %v6841_v1 }
 0xef9   :  { %6492 = vmatpush3.bf16.msra.mxu1 %v6974_v32 }
 0xefa   :  { %6529 = vmatprep.subr.bf16.mxu1 %v6841_v1 }
 0xefc   :  { %6095 = vmatmul.mubr.f32.vlgmr.msra.gmra.mrb[6].mxu1 %v3735_v62 }
 0xefd   :  { %6531 = vmatpush3.bf16.msra.mxu1 %v6966_v28  ;;  %6171 = vmatprep.mubr.msk.f32.mxu1 %vm6842_vm1, %v6843_v2 }
 0xefe   :  { %6532 = vmatprep.subr.bf16.mxu1 %v6841_v1 }
 0xf01   :  { %6534 = vmatpush3.bf16.msra.mxu1 %v6974_v32 }
 0xf02   :  { %6535 = vmatprep.subr.bf16.mxu1 %v6841_v1 }
 0xfcf   :  { %v4147_v6 = vpop.f32.mrb[6].mxu1 }
 0xfd0   :  { %v4158_v7 = vadd.f32 %v4147_v6, %v7311_v40  ;;  %v6096_v22 = vpop.f32.mrb[7].mxu1  ;;  %v4151_v54 = vadd.f32 %v4147_v6, %v3660_v16 }
 0xfd2   :  { %4160 = vrot.lane.b32.xlu0 %v4158_v7, %s6846_s15  ;;  %v5264_v34 = vmul.f32 -1.442695, %v4151_v54 }
 0xfd4   :  { %6748 = vpow2.f32 %v5264_v34 }
 0xfde   :  { %v6749_v35 = vpop.eup %6748 }
 0xfdf   :  { %v4155_v36 = vadd.f32 1.0, %v6749_v35 }
 0xfe1   :  { %6750 = vrcp.f32 %v4155_v36 }
 0xfeb   :  { %v6751_v41 = vpop.eup %6750 }
 0xfec   :  { %v4170_v53 = vsub.f32 1.0, %v6751_v41  ;;  %v4176_v60 = vmul.f32 %v6751_v41, %v7514_v24 }
0x1044   :  { %v4161_v29 = vpop.permute.xlu0 %4160 }
0x1045   :  { %v4163_v42 = vmul.f32 %v6751_v41, %v4161_v29 }
0x1047   :  { %4165 = vrot.lane.b32.xlu1 %v4163_v42, %s6846_s15 }
0x10b9   :  { %v4166_v45 = vpop.permute.xlu1 %4165 }
0x10ba   :  { %v4168_v52 = vadd.f32 %v4166_v45, %v3660_v16 }
0x10bc   :  { %6752 = vtanh.f32 %v4168_v52 }
0x10c6   :  { %v6753_v50 = vpop.eup %6752 }
0x10c7   :  { %4172 = vrot.lane.b32.xlu0 %v6753_v50, %s6848_s3  ;;  %v5268_v50 = vld [vmem:[#allocation4] ss:$0 sm:$0xff] }
0x1139   :  { %v4173_v59 = vpop.permute.xlu0 %4172 }
0x113a   :  { %v4175_v63 = vmul.f32 %v4173_v59, %v4170_v53 }
0x113c   :  { %v4177_v0 = vadd.f32 %v4176_v60, %v4175_v63 }
0x113e   :  { %4181 = vrot.lane.b32.xlu1 %v4177_v0, %s6848_s3 }
0x11b0   :  { %v4182_v3 = vpop.permute.xlu1 %4181 }
0x11b1   :  { %v4183_v4 = vsel %vm73_vm0, %v4182_v3, 0 }
0x11b2   :  { %v4254_v12 = vand.u32 4294901760, %v4183_v4 }
0x11b4   :  { %v4255_v13 = vsub.f32 %v4183_v4, %v4254_v12 }
0x11b6   :  { %v4256_v18 = vand.u32 4294901760, %v4255_v13 }
0x11b8   :  { %v4257_v14 = vsub.f32 %v4255_v13, %v4256_v18 }
0x11ba   :  { %v4258_v15 = vand.u32 4294901760, %v4257_v14 }
0x11bc   :  { %6106 = vmatmul.mubr.f32.vlgmr.msra.gmra.mrb[12].mxu0 %v4258_v15 }
0x11bd   :  { %6501 = vmatpush3.bf16.msra.mxu0 %v7039_v8  ;;  %6116 = vmatprep.mubr.msk.f32.mxu0 %vm6842_vm1, %v6843_v2 }
0x11be   :  { %6502 = vmatprep.subr.bf16.mxu0 %v6841_v1 }
0x11c1   :  { %6504 = vmatpush3.bf16.msra.mxu0 %v7043_v11 }
0x11c2   :  { %6505 = vmatprep.subr.bf16.mxu0 %v6841_v1 }
0x11c4   :  { %6117 = vmatmul.mubr.f32.vlgmr.msra.gmra.mrb[12].mxu0 %v4254_v12 }
0x11c5   :  { %6507 = vmatpush3.bf16.msra.mxu0 %v7007_v48  ;;  %6127 = vmatprep.mubr.msk.f32.mxu0 %vm6842_vm1, %v6843_v2 }
0x11c6   :  { %6508 = vmatprep.subr.bf16.mxu0 %v6841_v1 }
0x11c9   :  { %6510 = vmatpush3.bf16.msra.mxu0 %v7034_v5 }
0x11ca   :  { %6511 = vmatprep.subr.bf16.mxu0 %v6841_v1 }
0x11cc   :  { %6128 = vmatmul.mubr.f32.vlgmr.msra.gmra.mrb[12].mxu0 %v4255_v13 }
0x11cd   :  { %6513 = vmatpush3.bf16.msra.mxu0 %v6966_v28  ;;  %6138 = vmatprep.mubr.msk.f32.mxu0 %vm6842_vm1, %v6843_v2 }
0x11ce   :  { %6514 = vmatprep.subr.bf16.mxu0 %v6841_v1 }
0x11d1   :  { %6516 = vmatpush3.bf16.msra.mxu0 %v6974_v32 }
0x11d2   :  { %6517 = vmatprep.subr.bf16.mxu0 %v6841_v1 }
0x11d4   :  { %6139 = vmatmul.mubr.f32.vlgmr.msra.gmra.mrb[12].mxu0 %v4256_v18 }
0x11d5   :  { %6519 = vmatpush3.bf16.msra.mxu0 %v7184_v23  ;;  %6149 = vmatprep.mubr.msk.f32.mxu0 %vm6842_vm1, %v6843_v2 }
0x11d6   :  { %6520 = vmatprep.subr.bf16.mxu0 %v6841_v1 }
0x11d9   :  { %6522 = vmatpush3.bf16.msra.mxu0 %v7208_v21 }
0x11da   :  { %6523 = vmatprep.subr.bf16.mxu0 %v6841_v1 }
0x11dc   :  { %6150 = vmatmul.mubr.f32.vlgmr.msra.gmra.mrb[12].mxu0 %v4254_v12 }
0x11dd   :  { %6525 = vmatpush3.bf16.msra.mxu0 %v6966_v28  ;;  %6160 = vmatprep.mubr.msk.f32.mxu0 %vm6842_vm1, %v6843_v2 }
0x11de   :  { %6526 = vmatprep.subr.bf16.mxu0 %v6841_v1 }
0x11e1   :  { %6528 = vmatpush3.bf16.msra.mxu0 %v6974_v32 }
0x11e4   :  { %6161 = vmatmul.mubr.f32.vlgmr.msra.gmra.mrb[12].mxu0 %v4254_v12 }
0x12b7   :  { %v4666_v44 = vpop.f32.mrb[12].mxu0 }
0x12b8   :  { %v4677_v46 = vadd.f32 %v4666_v44, %v7311_v40  ;;  %v6162_v47 = vpop.f32.mrb[13].mxu0  ;;  %v4670_v51 = vadd.f32 %v4666_v44, %v4179_v49 }
0x12ba   :  { %4679 = vrot.lane.b32.xlu0 %v4677_v46, %s6846_s15  ;;  %v5265_v55 = vmul.f32 -1.442695, %v4670_v51 }
0x12bc   :  { %6754 = vpow2.f32 %v5265_v55 }
0x12c6   :  { %v6755_v20 = vpop.eup %6754 }
0x12c7   :  { %v4674_v33 = vadd.f32 1.0, %v6755_v20 }
0x12c9   :  { %6756 = vrcp.f32 %v4674_v33 }
0x12d3   :  { %v6757_v9 = vpop.eup %6756 }
0x12d4   :  { %v4689_v25 = vsub.f32 1.0, %v6757_v9  ;;  %v4695_v26 = vmul.f32 %v6757_v9, %v4177_v0 }
0x132c   :  { %v4680_v10 = vpop.permute.xlu0 %4679 }
0x132d   :  { %v4682_v17 = vmul.f32 %v6757_v9, %v4680_v10 }
0x132f   :  { %4684 = vrot.lane.b32.xlu1 %v4682_v17, %s6846_s15 }
0x13a1   :  { %v4685_v27 = vpop.permute.xlu1 %4684 }
0x13a2   :  { %v4687_v57 = vadd.f32 %v4685_v27, %v4179_v49 }
0x13a4   :  { %6758 = vtanh.f32 %v4687_v57 }
0x13ae   :  { %v6759_v58 = vpop.eup %6758 }
0x13af   :  { %4691 = vrot.lane.b32.xlu0 %v6759_v58, %s6848_s3 }
0x1421   :  { %v4692_v39 = vpop.permute.xlu0 %4691 }
0x1422   :  { %v4694_v43 = vmul.f32 %v4692_v39, %v4689_v25 }
0x1424   :  { %v7595_v19 = vadd.f32 %v4695_v26, %v4694_v43 }
0x1426   :  { %4700 = vrot.lane.b32.xlu1 %v7595_v19, %s6848_s3 }
0x1498   :  { %v4701_v24 = vpop.permute.xlu1 %4700 }
0x1499   :  { %v4702_v56 = vsel %vm73_vm0, %v4701_v24, 0 }
0x149a   :  { %v4773_v61 = vand.u32 4294901760, %v4702_v56 }
0x149c   :  { %v4774_v62 = vsub.f32 %v4702_v56, %v4773_v61 }
0x149e   :  { %v4775_v30 = vand.u32 4294901760, %v4774_v62 }
0x14a0   :  { %v4776_v31 = vsub.f32 %v4774_v62, %v4775_v30 }
0x14a2   :  { %v4777_v37 = vand.u32 4294901760, %v4776_v31 }
0x14a4   :  { %6172 = vmatmul.mubr.f32.vlgmr.msra.gmra.mrb[8].mxu1 %v4777_v37 }
0x14a5   :  { %6537 = vmatpush3.bf16.msra.mxu1 %v7039_v8  ;;  %6182 = vmatprep.mubr.msk.f32.mxu1 %vm6842_vm1, %v6843_v2 }
0x14a6   :  { %6538 = vmatprep.subr.bf16.mxu1 %v6841_v1 }
0x14a9   :  { %6540 = vmatpush3.bf16.msra.mxu1 %v7043_v11  ;;  %v4698_v11 = vld [vmem:[#allocation3 + $0x38] sm:$0xff] }
0x14aa   :  { %6541 = vmatprep.subr.bf16.mxu1 %v6841_v1 }
0x14ac   :  { %6183 = vmatmul.mubr.f32.vlgmr.msra.gmra.mrb[8].mxu1 %v4773_v61 }
0x14ad   :  { %6543 = vmatpush3.bf16.msra.mxu1 %v7007_v48  ;;  %6193 = vmatprep.mubr.msk.f32.mxu1 %vm6842_vm1, %v6843_v2 }
0x14ae   :  { %6544 = vmatprep.subr.bf16.mxu1 %v6841_v1 }
0x14b1   :  { %6546 = vmatpush3.bf16.msra.mxu1 %v7034_v5 }
0x14b2   :  { %6547 = vmatprep.subr.bf16.mxu1 %v6841_v1 }
0x14b4   :  { %6194 = vmatmul.mubr.f32.vlgmr.msra.gmra.mrb[8].mxu1 %v4774_v62 }
0x14b5   :  { %6549 = vmatpush3.bf16.msra.mxu1 %v6966_v28  ;;  %6204 = vmatprep.mubr.msk.f32.mxu1 %vm6842_vm1, %v6843_v2 }
0x14b6   :  { %6550 = vmatprep.subr.bf16.mxu1 %v6841_v1 }
0x14b9   :  { %6552 = vmatpush3.bf16.msra.mxu1 %v6974_v32 }
0x14ba   :  { %6553 = vmatprep.subr.bf16.mxu1 %v6841_v1 }
0x14bc   :  { %6205 = vmatmul.mubr.f32.vlgmr.msra.gmra.mrb[8].mxu1 %v4775_v30 }
0x14bd   :  { %6555 = vmatpush3.bf16.msra.mxu1 %v7184_v23  ;;  %6215 = vmatprep.mubr.msk.f32.mxu1 %vm6842_vm1, %v6843_v2 }
0x14be   :  { %6556 = vmatprep.subr.bf16.mxu1 %v6841_v1 }
0x14c1   :  { %6558 = vmatpush3.bf16.msra.mxu1 %v7208_v21 }
0x14c2   :  { %6559 = vmatprep.subr.bf16.mxu1 %v6841_v1 }
0x14c4   :  { %6216 = vmatmul.mubr.f32.vlgmr.msra.gmra.mrb[8].mxu1 %v4773_v61 }
0x14c5   :  { %6561 = vmatpush3.bf16.msra.mxu1 %v6966_v28  ;;  %6226 = vmatprep.mubr.msk.f32.mxu1 %vm6842_vm1, %v6843_v2 }
0x14c6   :  { %6562 = vmatprep.subr.bf16.mxu1 %v6841_v1  ;;  %v5267_v1 = vld [vmem:[%s7650_s5] ss:$0 sm:$0xff] }
0x14c9   :  { %6564 = vmatpush3.bf16.msra.mxu1 %v6974_v32 }
0x14cc   :  { %6227 = vmatmul.mubr.f32.vlgmr.msra.gmra.mrb[8].mxu1 %v4773_v61 }
0x159f   :  { %v5185_v48 = vpop.f32.mrb[8].mxu1 }
0x15a0   :  { %v5196_v5 = vadd.f32 %v5185_v48, %v7311_v40  ;;  %v6228_v8 = vpop.f32.mrb[9].mxu1  ;;  %v5189_v23 = vadd.f32 %v5185_v48, %v4698_v11 }
0x15a2   :  { %5198 = vrot.lane.b32.xlu0 %v5196_v5, %s6846_s15  ;;  %v5266_v21 = vmul.f32 -1.442695, %v5189_v23 }
0x15a4   :  { %6760 = vpow2.f32 %v5266_v21 }
0x15ae   :  { %v6761_v38 = vpop.eup %6760 }
0x15af   :  { %v5193_v28 = vadd.f32 1.0, %v6761_v38 }
0x15b1   :  { %6762 = vrcp.f32 %v5193_v28 }
0x15bb   :  { %v6763_v6 = vpop.eup %6762 }
0x15bc   :  { %v5208_v16 = vsub.f32 1.0, %v6763_v6  ;;  %v5214_v35 = vmul.f32 %v6763_v6, %v7595_v19 }
0x1614   :  { %v5199_v2 = vpop.permute.xlu0 %5198 }
0x1615   :  { %v5201_v7 = vmul.f32 %v6763_v6, %v5199_v2 }
0x1617   :  { %5203 = vrot.lane.b32.xlu1 %v5201_v7, %s6846_s15 }
0x161b   :  { %5230 = vrot.lane.b32.xlu1 %v5267_v1, %s6847_s4 }
0x1689   :  { %v5204_v32 = vpop.permute.xlu1 %5203 }
0x168a   :  { %v5206_v40 = vadd.f32 %v5204_v32, %v4698_v11 }
0x168c   :  { %6764 = vtanh.f32 %v5206_v40 }
0x168d   :  { %v5231_v36 = vpop.permute.xlu1 %5230 }
0x1696   :  { %v6765_v22 = vpop.eup %6764 }
0x1697   :  { %5210 = vrot.lane.b32.xlu0 %v6765_v22, %s6848_s3 }
0x1709   :  { %v5211_v54 = vpop.permute.xlu0 %5210 }
0x170a   :  { %v5213_v34 = vmul.f32 %v5211_v54, %v5208_v16 }
0x170c   :  { %v5215_v41 = vadd.f32 %v5214_v35, %v5213_v34 }
0x170e   :  { %v5233_v29 = vmul.f32 %v5231_v36, %v5215_v41 }
0x1710   :  { %5235 = vrot.lane.b32.xlu0 %v5233_v29, %s6848_s3 }
0x1714   :  { %5217 = vrot.lane.b32.xlu0 %v5215_v41, %s6848_s3 }
0x1782   :  { %v5236_v42 = vpop.permute.xlu0 %5235 }
0x1783   :  { %v5238_v45 = vsel %vm73_vm0, %v5236_v42, 0.0 }
0x1784   :  { %5239 = vadd.xlane.f32.xlu1 %v5238_v45 }
0x1786   :  { %v5218_v52 = vpop.permute.xlu0 %5217 }
0x1787   :  { %5220 = vst.msk [vmem:[#allocation2] sm:$0xff] %vm73_vm0, %v5218_v52 }
0x1811   :  { %v5240_v53 = vpop.xlane.xlu1 %5239 }
0x1812   :  { %v5248_v59 = vadd.f32 %v5268_v50, %v5240_v53 }
0x1814   :  { %5250 = vst.msk [vmem:[%s7652_s7] sm:$0xff] %vm5249_vm3, %v5248_v59 }
0x1815   :  { %5255 = vsyncpa [#allocation6], 1 }
0x1816   :  { %5256 = vsyncpa [#allocation8], 1 }

</bundles_post_ra>
